<compile_context>
chip_gen: v6e
topology: v6e:2x2x1
jax: 0.10.0
libtpu: 0.0.40
codegen_flags: <defaults>
</compile_context>

<pallas_src>
import functools

import jax
import jax.numpy as jnp
from jax.experimental import pallas as pl
from jax.experimental.pallas import tpu as pltpu


# ----------------------------- Pallas kernel --------------------------------

def decoder_kernel(latent_ref, w_lh_ref, b_lh_ref, w_hh_ref, w_ih_ref,
                   b_ref, w_ho_ref, b_ho_ref, out_ref, top_ref,
                   *, seq_len, depth, hidden, batch):
    """Whole decoder forward in one invocation (lane-dense layout).

    Layouts:
      latent: (B, L) f32            w_lh: (L, H) bf16     b_lh: (1, H) f32
      w_hh:   (depth, H, 4H) bf16   w_ih: (depth, H, 4H) bf16 (layer 0 unused)
      b:      (depth, 1, 4H) f32    -- gate order [i, f, o, g]
      w_ho:   (H, O) bf16           b_ho: (1, O) f32
      out:    (seq_len*B, O) f32    row index = t*B + b
      top_ref (scratch): (seq_len*B, H) f32
    """
    H, B = hidden, batch
    bf16 = jnp.bfloat16

    # h_0 = latent_to_hidden(latent), replicated across layers; c_0 = 0.
    h0 = (jnp.dot(latent_ref[...].astype(bf16), w_lh_ref[...],
                  preferred_element_type=jnp.float32)
          + b_lh_ref[...])                                       # (B, H) f32
    h = [h0 for _ in range(depth)]
    c = [jnp.zeros_like(h0) for _ in range(depth)]

    # Fully unrolled time loop (seq_len is small & static).  Weight/bias refs
    # are read at the call sites (not hoisted into Python values): vld has
    # slack while the recurrence is MXU/EUP-latency bound, and this keeps
    # vreg live ranges bounded across the unrolled loop.
    for t in range(seq_len):
        for l in range(depth):
            gates = jnp.dot(h[l].astype(bf16), w_hh_ref[l],
                            preferred_element_type=jnp.float32)  # (B, 4H)
            if l > 0:
                # Layer 0's input is identically zero -> skip its W_ih matmul.
                gates = gates + jnp.dot(h[l - 1].astype(bf16), w_ih_ref[l],
                                        preferred_element_type=jnp.float32)
            gates = gates + b_ref[l]                             # [i, f, o, g]

            # One sigmoid over the contiguous i|f|o lane slab, one tanh for g.
            sig = jax.nn.sigmoid(gates[:, :3 * H])
            g_g = jnp.tanh(gates[:, 3 * H:])
            i_g = sig[:, 0 * H:1 * H]
            f_g = sig[:, 1 * H:2 * H]
            o_g = sig[:, 2 * H:3 * H]

            c[l] = f_g * c[l] + i_g * g_g
            h[l] = o_g * jnp.tanh(c[l])

        # Store the top-layer state immediately (bounds live ranges; the
        # masked store hides under MXU latency of the next step).
        top_ref[pl.ds(t * B, B), :] = h[depth - 1]

    # Batched hidden->output projection off the recurrence path + single store.
    out_ref[...] = (jnp.dot(top_ref[...].astype(bf16), w_ho_ref[...],
                            preferred_element_type=jnp.float32)
                    + b_ho_ref[...]).astype(out_ref.dtype)


# ------------------------------- wrapper -------------------------------------

@functools.partial(jax.jit, static_argnames=("seq_len",))
def decoder_forward(latent, w_lh, b_lh, w_ih, w_hh, b, w_ho, b_ho, *, seq_len):
    B = latent.shape[0]
    depth, _four_h, H = w_hh.shape
    out_size = w_ho.shape[0]

    def reorder(x):   # [i, f, g, o] -> [i, f, o, g] along the 4H axis (axis=1)
        return jnp.concatenate(
            [x[:, :2 * H], x[:, 3 * H:4 * H], x[:, 2 * H:3 * H]], axis=1)

    # Layout plumbing (outside the kernel): transpose weights to (in, out) so
    # the recurrence is lane-dense; cast matmul weights to bf16.
    w_lh_t = w_lh.T.astype(jnp.bfloat16)                             # (L, H)
    b_lh_r = b_lh.T                                                  # (1, H) f32
    w_hh_t = reorder(w_hh).transpose(0, 2, 1).astype(jnp.bfloat16)   # (d, H, 4H)
    w_ih_t = reorder(w_ih).transpose(0, 2, 1).astype(jnp.bfloat16)   # (d, H, 4H)
    b_r = reorder(b).transpose(0, 2, 1)                              # (d, 1, 4H)
    w_ho_t = w_ho.T.astype(jnp.bfloat16)                             # (H, O)
    b_ho_r = b_ho.T                                                  # (1, O) f32

    kernel = functools.partial(decoder_kernel, seq_len=seq_len, depth=depth,
                               hidden=H, batch=B)

    vmem_spec = pl.BlockSpec(memory_space=pltpu.MemorySpace.VMEM)

    # No grid: single invocation, all operands fully resident in VMEM (total
    # footprint << 1 MiB on every generation, incl. v7x's 64 MiB VMEM), so no
    # pipeline double-buffers and no vmem_limit override are needed.
    out_flat = pl.pallas_call(
        kernel,
        out_shape=jax.ShapeDtypeStruct((seq_len * B, out_size), jnp.float32),
        in_specs=[vmem_spec] * 8,
        out_specs=vmem_spec,
        scratch_shapes=[pltpu.VMEM((seq_len * B, H), jnp.float32)],
    )(latent, w_lh_t, b_lh_r, w_hh_t, w_ih_t, b_r, w_ho_t, b_ho_r)

    # (S*B, O) -> (S, B, O); row index was t*B + b, so a plain reshape suffices
    # (no transpose needed in the wrapper).
    return out_flat.reshape(seq_len, B, out_size)


# --------------------------- pure-JAX reference -------------------------------

def decoder_reference(latent, w_lh, b_lh, w_ih, w_hh, b, w_ho, b_ho, seq_len):
    depth, _four_h, H = w_hh.shape
    B = latent.shape[0]
    h0 = latent @ w_lh.T + b_lh[:, 0]
    h = [h0 for _ in range(depth)]
    c = [jnp.zeros((B, H), jnp.float32) for _ in range(depth)]
    outs = []
    for _ in range(seq_len):
        x = jnp.zeros((B, H), jnp.float32)   # decoder inputs are zeros
        for l in range(depth):
            gates = h[l] @ w_hh[l].T + x @ w_ih[l].T + b[l, :, 0]
            i = jax.nn.sigmoid(gates[:, 0 * H:1 * H])
            f = jax.nn.sigmoid(gates[:, 1 * H:2 * H])
            g = jnp.tanh(gates[:, 2 * H:3 * H])
            o = jax.nn.sigmoid(gates[:, 3 * H:4 * H])
            c[l] = f * c[l] + i * g
            h[l] = o * jnp.tanh(c[l])
            x = h[l]
        outs.append(x @ w_ho.T + b_ho[:, 0])
    return jnp.stack(outs, axis=0)


# --------------------------------- main ---------------------------------------

if __name__ == "__main__":
    # Small shapes consistent with the module's __init__/forward.
    seq_len = 8          # sequence_length
    batch = 4            # batch_size
    hidden = 32          # hidden_size  (4H = 128 lanes, exactly one vreg row)
    depth = 2            # hidden_layer_depth
    latent_len = 16      # latent_length
    out_size = 2         # output_size (mean, log std)

    key = jax.random.PRNGKey(0)
    ks = jax.random.split(key, 8)

    def xavier(k, shape):
        fan_out, fan_in = shape   # PyTorch Linear weight layout: (out, in)
        limit = (6.0 / (fan_in + fan_out)) ** 0.5
        return jax.random.uniform(k, shape, jnp.float32, -limit, limit)

    latent = jax.random.normal(ks[0], (batch, latent_len), jnp.float32)

    # latent_to_hidden: Linear(latent_len -> hidden), PyTorch (out, in) layout.
    w_lh = xavier(ks[1], (hidden, latent_len))
    b_lh = jnp.zeros((hidden, 1), jnp.float32)

    # LSTM weights in PyTorch (4H, in) layout. Layer 0's true W_ih is (4H, 1)
    # but its input is identically zero, so its slot is zero-padded to (4H, H)
    # and never read by the kernel.
    w_ih = jnp.zeros((depth, 4 * hidden, hidden), jnp.float32)
    for l in range(1, depth):
        w_ih = w_ih.at[l].set(
            0.1 * jax.random.normal(jax.random.fold_in(ks[2], l),
                                    (4 * hidden, hidden), jnp.float32))
    w_hh = 0.1 * jax.random.normal(ks[3], (depth, 4 * hidden, hidden),
                                   jnp.float32)
    b_ih = 0.1 * jax.random.normal(ks[4], (depth, 4 * hidden, 1), jnp.float32)
    b_hh = 0.1 * jax.random.normal(ks[5], (depth, 4 * hidden, 1), jnp.float32)
    b = b_ih + b_hh   # PyTorch adds both biases; combine in glue

    # hidden_to_output: Linear(hidden -> out_size), PyTorch (out, in) layout.
    w_ho = xavier(ks[6], (out_size, hidden))
    b_ho = jnp.zeros((out_size, 1), jnp.float32)

    out = decoder_forward(latent, w_lh, b_lh, w_ih, w_hh, b, w_ho, b_ho,
                          seq_len=seq_len)
    out = jax.block_until_ready(out)

    ref = decoder_reference(latent, w_lh, b_lh, w_ih, w_hh, b, w_ho, b_ho,
                            seq_len)
    assert out.shape == (seq_len, batch, out_size)
    # Tolerance relaxed vs. the previous f32 kernel: matmul operands are bf16
    # on the MXU (per the perf review); elementwise state math stays f32.
    assert jnp.allclose(out, ref, atol=3e-2, rtol=3e-2), "mismatch vs reference"

    print("KERNEL_OK")
</pallas_src>

<mosaic_0001>
module attributes {stable_mosaic.version = 11 : i64} {
  func.func @decoder_kernel(%arg0: memref<4x16xf32, #tpu.memory_space<vmem>>, %arg1: memref<16x32xbf16, #tpu.memory_space<vmem>>, %arg2: memref<1x32xf32, #tpu.memory_space<vmem>>, %arg3: memref<2x32x128xbf16, #tpu.memory_space<vmem>>, %arg4: memref<2x32x128xbf16, #tpu.memory_space<vmem>>, %arg5: memref<2x1x128xf32, #tpu.memory_space<vmem>>, %arg6: memref<32x2xbf16, #tpu.memory_space<vmem>>, %arg7: memref<1x2xf32, #tpu.memory_space<vmem>>, %arg8: memref<32x2xf32, #tpu.memory_space<vmem>>, %arg9: memref<32x32xf32, #tpu.memory_space<vmem>>) attributes {dimension_semantics = [], scalar_prefetch = 0 : i64, scratch_operands = 1 : i64, tpu.core_type = #tpu.core_type<tc>} {
    %c0 = arith.constant 0 : index
    %c0_0 = arith.constant 0 : index
    %0 = vector.load %arg0[%c0, %c0_0] : memref<4x16xf32, #tpu.memory_space<vmem>>, vector<4x16xf32>
    %1 = arith.truncf %0 : vector<4x16xf32> to vector<4x16xbf16>
    %c0_1 = arith.constant 0 : index
    %c0_2 = arith.constant 0 : index
    %2 = vector.load %arg1[%c0_1, %c0_2] : memref<16x32xbf16, #tpu.memory_space<vmem>>, vector<16x32xbf16>
    %cst = arith.constant dense<0.000000e+00> : vector<4x32xf32>
    %3 = tpu.matmul %1, %2, %cst {dimension_numbers = #tpu.dot_dimension_numbers<[1], [0], [0], [1], [0, 0, 1, 1], [], []>} : vector<4x16xbf16>, vector<16x32xbf16>, vector<4x32xf32> -> vector<4x32xf32>
    %c0_3 = arith.constant 0 : index
    %c0_4 = arith.constant 0 : index
    %4 = vector.load %arg2[%c0_3, %c0_4] : memref<1x32xf32, #tpu.memory_space<vmem>>, vector<1x32xf32>
    %5 = vector.broadcast %4 : vector<1x32xf32> to vector<4x32xf32>
    %6 = arith.addf %3, %5 : vector<4x32xf32>
    %cst_5 = arith.constant 0.000000e+00 : f32
    %7 = vector.broadcast %cst_5 : f32 to vector<4x32xf32>
    %cst_6 = arith.constant 0.000000e+00 : f32
    %8 = vector.broadcast %cst_6 : f32 to vector<4x32xf32>
    %9 = arith.truncf %6 : vector<4x32xf32> to vector<4x32xbf16>
    %c0_7 = arith.constant 0 : index
    %c0_8 = arith.constant 0 : index
    %c0_9 = arith.constant 0 : index
    %10 = vector.load %arg3[%c0_7, %c0_8, %c0_9] : memref<2x32x128xbf16, #tpu.memory_space<vmem>>, vector<1x32x128xbf16>
    %11 = vector.shape_cast %10 : vector<1x32x128xbf16> to vector<32x128xbf16>
    %cst_10 = arith.constant dense<0.000000e+00> : vector<4x128xf32>
    %12 = tpu.matmul %9, %11, %cst_10 {dimension_numbers = #tpu.dot_dimension_numbers<[1], [0], [0], [1], [0, 0, 1, 1], [], []>} : vector<4x32xbf16>, vector<32x128xbf16>, vector<4x128xf32> -> vector<4x128xf32>
    %c0_11 = arith.constant 0 : index
    %c0_12 = arith.constant 0 : index
    %c0_13 = arith.constant 0 : index
    %13 = vector.load %arg5[%c0_11, %c0_12, %c0_13] : memref<2x1x128xf32, #tpu.memory_space<vmem>>, vector<1x1x128xf32>
    %14 = vector.shape_cast %13 : vector<1x1x128xf32> to vector<1x128xf32>
    %15 = vector.broadcast %14 : vector<1x128xf32> to vector<4x128xf32>
    %16 = arith.addf %12, %15 : vector<4x128xf32>
    %17 = vector.extract_strided_slice %16 {offsets = [0, 0], sizes = [4, 96], strides = [1, 1]} : vector<4x128xf32> to vector<4x96xf32>
    %18 = arith.negf %17 : vector<4x96xf32>
    %19 = math.exp %18 : vector<4x96xf32>
    %cst_14 = arith.constant 1.000000e+00 : f32
    %20 = vector.broadcast %cst_14 : f32 to vector<4x96xf32>
    %21 = arith.addf %20, %19 : vector<4x96xf32>
    %22 = arith.divf %20, %21 : vector<4x96xf32>
    %23 = vector.extract_strided_slice %16 {offsets = [0, 96], sizes = [4, 32], strides = [1, 1]} : vector<4x128xf32> to vector<4x32xf32>
    %24 = math.tanh %23 : vector<4x32xf32>
    %25 = vector.extract_strided_slice %22 {offsets = [0, 0], sizes = [4, 32], strides = [1, 1]} : vector<4x96xf32> to vector<4x32xf32>
    %26 = vector.extract_strided_slice %22 {offsets = [0, 32], sizes = [4, 32], strides = [1, 1]} : vector<4x96xf32> to vector<4x32xf32>
    %27 = vector.extract_strided_slice %22 {offsets = [0, 64], sizes = [4, 32], strides = [1, 1]} : vector<4x96xf32> to vector<4x32xf32>
    %28 = arith.mulf %26, %7 : vector<4x32xf32>
    %29 = arith.mulf %25, %24 : vector<4x32xf32>
    %30 = arith.addf %28, %29 : vector<4x32xf32>
    %31 = math.tanh %30 : vector<4x32xf32>
    %32 = arith.mulf %27, %31 : vector<4x32xf32>
    %33 = arith.truncf %6 : vector<4x32xf32> to vector<4x32xbf16>
    %c1 = arith.constant 1 : index
    %c0_15 = arith.constant 0 : index
    %c0_16 = arith.constant 0 : index
    %34 = vector.load %arg3[%c1, %c0_15, %c0_16] : memref<2x32x128xbf16, #tpu.memory_space<vmem>>, vector<1x32x128xbf16>
    %35 = vector.shape_cast %34 : vector<1x32x128xbf16> to vector<32x128xbf16>
    %cst_17 = arith.constant dense<0.000000e+00> : vector<4x128xf32>
    %36 = tpu.matmul %33, %35, %cst_17 {dimension_numbers = #tpu.dot_dimension_numbers<[1], [0], [0], [1], [0, 0, 1, 1], [], []>} : vector<4x32xbf16>, vector<32x128xbf16>, vector<4x128xf32> -> vector<4x128xf32>
    %37 = arith.truncf %32 : vector<4x32xf32> to vector<4x32xbf16>
    %c1_18 = arith.constant 1 : index
    %c0_19 = arith.constant 0 : index
    %c0_20 = arith.constant 0 : index
    %38 = vector.load %arg4[%c1_18, %c0_19, %c0_20] : memref<2x32x128xbf16, #tpu.memory_space<vmem>>, vector<1x32x128xbf16>
    %39 = vector.shape_cast %38 : vector<1x32x128xbf16> to vector<32x128xbf16>
    %cst_21 = arith.constant dense<0.000000e+00> : vector<4x128xf32>
    %40 = tpu.matmul %37, %39, %cst_21 {dimension_numbers = #tpu.dot_dimension_numbers<[1], [0], [0], [1], [0, 0, 1, 1], [], []>} : vector<4x32xbf16>, vector<32x128xbf16>, vector<4x128xf32> -> vector<4x128xf32>
    %41 = arith.addf %36, %40 : vector<4x128xf32>
    %c1_22 = arith.constant 1 : index
    %c0_23 = arith.constant 0 : index
    %c0_24 = arith.constant 0 : index
    %42 = vector.load %arg5[%c1_22, %c0_23, %c0_24] : memref<2x1x128xf32, #tpu.memory_space<vmem>>, vector<1x1x128xf32>
    %43 = vector.shape_cast %42 : vector<1x1x128xf32> to vector<1x128xf32>
    %44 = vector.broadcast %43 : vector<1x128xf32> to vector<4x128xf32>
    %45 = arith.addf %41, %44 : vector<4x128xf32>
    %46 = vector.extract_strided_slice %45 {offsets = [0, 0], sizes = [4, 96], strides = [1, 1]} : vector<4x128xf32> to vector<4x96xf32>
    %47 = arith.negf %46 : vector<4x96xf32>
    %48 = math.exp %47 : vector<4x96xf32>
    %cst_25 = arith.constant 1.000000e+00 : f32
    %49 = vector.broadcast %cst_25 : f32 to vector<4x96xf32>
    %50 = arith.addf %49, %48 : vector<4x96xf32>
    %51 = arith.divf %49, %50 : vector<4x96xf32>
    %52 = vector.extract_strided_slice %45 {offsets = [0, 96], sizes = [4, 32], strides = [1, 1]} : vector<4x128xf32> to vector<4x32xf32>
    %53 = math.tanh %52 : vector<4x32xf32>
    %54 = vector.extract_strided_slice %51 {offsets = [0, 0], sizes = [4, 32], strides = [1, 1]} : vector<4x96xf32> to vector<4x32xf32>
    %55 = vector.extract_strided_slice %51 {offsets = [0, 32], sizes = [4, 32], strides = [1, 1]} : vector<4x96xf32> to vector<4x32xf32>
    %56 = vector.extract_strided_slice %51 {offsets = [0, 64], sizes = [4, 32], strides = [1, 1]} : vector<4x96xf32> to vector<4x32xf32>
    %57 = arith.mulf %55, %8 : vector<4x32xf32>
    %58 = arith.mulf %54, %53 : vector<4x32xf32>
    %59 = arith.addf %57, %58 : vector<4x32xf32>
    %60 = math.tanh %59 : vector<4x32xf32>
    %61 = arith.mulf %56, %60 : vector<4x32xf32>
    %c0_26 = arith.constant 0 : index
    %c0_27 = arith.constant 0 : index
    %62 = vector.load %arg9[%c0_26, %c0_27] : memref<32x32xf32, #tpu.memory_space<vmem>>, vector<4x32xf32>
    tpu.vector_store %arg9[%c0_26, %c0_27], %61 {strides = array<i32>} : memref<32x32xf32, #tpu.memory_space<vmem>>, vector<4x32xf32>,
    %63 = arith.truncf %32 : vector<4x32xf32> to vector<4x32xbf16>
    %c0_28 = arith.constant 0 : index
    %c0_29 = arith.constant 0 : index
    %c0_30 = arith.constant 0 : index
    %64 = vector.load %arg3[%c0_28, %c0_29, %c0_30] : memref<2x32x128xbf16, #tpu.memory_space<vmem>>, vector<1x32x128xbf16>
    %65 = vector.shape_cast %64 : vector<1x32x128xbf16> to vector<32x128xbf16>
    %cst_31 = arith.constant dense<0.000000e+00> : vector<4x128xf32>
    %66 = tpu.matmul %63, %65, %cst_31 {dimension_numbers = #tpu.dot_dimension_numbers<[1], [0], [0], [1], [0, 0, 1, 1], [], []>} : vector<4x32xbf16>, vector<32x128xbf16>, vector<4x128xf32> -> vector<4x128xf32>
    %c0_32 = arith.constant 0 : index
    %c0_33 = arith.constant 0 : index
    %c0_34 = arith.constant 0 : index
    %67 = vector.load %arg5[%c0_32, %c0_33, %c0_34] : memref<2x1x128xf32, #tpu.memory_space<vmem>>, vector<1x1x128xf32>
    %68 = vector.shape_cast %67 : vector<1x1x128xf32> to vector<1x128xf32>
    %69 = vector.broadcast %68 : vector<1x128xf32> to vector<4x128xf32>
    %70 = arith.addf %66, %69 : vector<4x128xf32>
    %71 = vector.extract_strided_slice %70 {offsets = [0, 0], sizes = [4, 96], strides = [1, 1]} : vector<4x128xf32> to vector<4x96xf32>
    %72 = arith.negf %71 : vector<4x96xf32>
    %73 = math.exp %72 : vector<4x96xf32>
    %cst_35 = arith.constant 1.000000e+00 : f32
    %74 = vector.broadcast %cst_35 : f32 to vector<4x96xf32>
    %75 = arith.addf %74, %73 : vector<4x96xf32>
    %76 = arith.divf %74, %75 : vector<4x96xf32>
    %77 = vector.extract_strided_slice %70 {offsets = [0, 96], sizes = [4, 32], strides = [1, 1]} : vector<4x128xf32> to vector<4x32xf32>
    %78 = math.tanh %77 : vector<4x32xf32>
    %79 = vector.extract_strided_slice %76 {offsets = [0, 0], sizes = [4, 32], strides = [1, 1]} : vector<4x96xf32> to vector<4x32xf32>
    %80 = vector.extract_strided_slice %76 {offsets = [0, 32], sizes = [4, 32], strides = [1, 1]} : vector<4x96xf32> to vector<4x32xf32>
    %81 = vector.extract_strided_slice %76 {offsets = [0, 64], sizes = [4, 32], strides = [1, 1]} : vector<4x96xf32> to vector<4x32xf32>
    %82 = arith.mulf %80, %30 : vector<4x32xf32>
    %83 = arith.mulf %79, %78 : vector<4x32xf32>
    %84 = arith.addf %82, %83 : vector<4x32xf32>
    %85 = math.tanh %84 : vector<4x32xf32>
    %86 = arith.mulf %81, %85 : vector<4x32xf32>
    %87 = arith.truncf %61 : vector<4x32xf32> to vector<4x32xbf16>
    %c1_36 = arith.constant 1 : index
    %c0_37 = arith.constant 0 : index
    %c0_38 = arith.constant 0 : index
    %88 = vector.load %arg3[%c1_36, %c0_37, %c0_38] : memref<2x32x128xbf16, #tpu.memory_space<vmem>>, vector<1x32x128xbf16>
    %89 = vector.shape_cast %88 : vector<1x32x128xbf16> to vector<32x128xbf16>
    %cst_39 = arith.constant dense<0.000000e+00> : vector<4x128xf32>
    %90 = tpu.matmul %87, %89, %cst_39 {dimension_numbers = #tpu.dot_dimension_numbers<[1], [0], [0], [1], [0, 0, 1, 1], [], []>} : vector<4x32xbf16>, vector<32x128xbf16>, vector<4x128xf32> -> vector<4x128xf32>
    %91 = arith.truncf %86 : vector<4x32xf32> to vector<4x32xbf16>
    %c1_40 = arith.constant 1 : index
    %c0_41 = arith.constant 0 : index
    %c0_42 = arith.constant 0 : index
    %92 = vector.load %arg4[%c1_40, %c0_41, %c0_42] : memref<2x32x128xbf16, #tpu.memory_space<vmem>>, vector<1x32x128xbf16>
    %93 = vector.shape_cast %92 : vector<1x32x128xbf16> to vector<32x128xbf16>
    %cst_43 = arith.constant dense<0.000000e+00> : vector<4x128xf32>
    %94 = tpu.matmul %91, %93, %cst_43 {dimension_numbers = #tpu.dot_dimension_numbers<[1], [0], [0], [1], [0, 0, 1, 1], [], []>} : vector<4x32xbf16>, vector<32x128xbf16>, vector<4x128xf32> -> vector<4x128xf32>
    %95 = arith.addf %90, %94 : vector<4x128xf32>
    %c1_44 = arith.constant 1 : index
    %c0_45 = arith.constant 0 : index
    %c0_46 = arith.constant 0 : index
    %96 = vector.load %arg5[%c1_44, %c0_45, %c0_46] : memref<2x1x128xf32, #tpu.memory_space<vmem>>, vector<1x1x128xf32>
    %97 = vector.shape_cast %96 : vector<1x1x128xf32> to vector<1x128xf32>
    %98 = vector.broadcast %97 : vector<1x128xf32> to vector<4x128xf32>
    %99 = arith.addf %95, %98 : vector<4x128xf32>
    %100 = vector.extract_strided_slice %99 {offsets = [0, 0], sizes = [4, 96], strides = [1, 1]} : vector<4x128xf32> to vector<4x96xf32>
    %101 = arith.negf %100 : vector<4x96xf32>
    %102 = math.exp %101 : vector<4x96xf32>
    %cst_47 = arith.constant 1.000000e+00 : f32
    %103 = vector.broadcast %cst_47 : f32 to vector<4x96xf32>
    %104 = arith.addf %103, %102 : vector<4x96xf32>
    %105 = arith.divf %103, %104 : vector<4x96xf32>
    %106 = vector.extract_strided_slice %99 {offsets = [0, 96], sizes = [4, 32], strides = [1, 1]} : vector<4x128xf32> to vector<4x32xf32>
    %107 = math.tanh %106 : vector<4x32xf32>
    %108 = vector.extract_strided_slice %105 {offsets = [0, 0], sizes = [4, 32], strides = [1, 1]} : vector<4x96xf32> to vector<4x32xf32>
    %109 = vector.extract_strided_slice %105 {offsets = [0, 32], sizes = [4, 32], strides = [1, 1]} : vector<4x96xf32> to vector<4x32xf32>
    %110 = vector.extract_strided_slice %105 {offsets = [0, 64], sizes = [4, 32], strides = [1, 1]} : vector<4x96xf32> to vector<4x32xf32>
    %111 = arith.mulf %109, %59 : vector<4x32xf32>
    %112 = arith.mulf %108, %107 : vector<4x32xf32>
    %113 = arith.addf %111, %112 : vector<4x32xf32>
    %114 = math.tanh %113 : vector<4x32xf32>
    %115 = arith.mulf %110, %114 : vector<4x32xf32>
    %c4 = arith.constant 4 : index
    %c0_48 = arith.constant 0 : index
    %116 = vector.load %arg9[%c4, %c0_48] : memref<32x32xf32, #tpu.memory_space<vmem>>, vector<4x32xf32>
    tpu.vector_store %arg9[%c4, %c0_48], %115 {strides = array<i32>} : memref<32x32xf32, #tpu.memory_space<vmem>>, vector<4x32xf32>,
    %117 = arith.truncf %86 : vector<4x32xf32> to vector<4x32xbf16>
    %c0_49 = arith.constant 0 : index
    %c0_50 = arith.constant 0 : index
    %c0_51 = arith.constant 0 : index
    %118 = vector.load %arg3[%c0_49, %c0_50, %c0_51] : memref<2x32x128xbf16, #tpu.memory_space<vmem>>, vector<1x32x128xbf16>
    %119 = vector.shape_cast %118 : vector<1x32x128xbf16> to vector<32x128xbf16>
    %cst_52 = arith.constant dense<0.000000e+00> : vector<4x128xf32>
    %120 = tpu.matmul %117, %119, %cst_52 {dimension_numbers = #tpu.dot_dimension_numbers<[1], [0], [0], [1], [0, 0, 1, 1], [], []>} : vector<4x32xbf16>, vector<32x128xbf16>, vector<4x128xf32> -> vector<4x128xf32>
    %c0_53 = arith.constant 0 : index
    %c0_54 = arith.constant 0 : index
    %c0_55 = arith.constant 0 : index
    %121 = vector.load %arg5[%c0_53, %c0_54, %c0_55] : memref<2x1x128xf32, #tpu.memory_space<vmem>>, vector<1x1x128xf32>
    %122 = vector.shape_cast %121 : vector<1x1x128xf32> to vector<1x128xf32>
    %123 = vector.broadcast %122 : vector<1x128xf32> to vector<4x128xf32>
    %124 = arith.addf %120, %123 : vector<4x128xf32>
    %125 = vector.extract_strided_slice %124 {offsets = [0, 0], sizes = [4, 96], strides = [1, 1]} : vector<4x128xf32> to vector<4x96xf32>
    %126 = arith.negf %125 : vector<4x96xf32>
    %127 = math.exp %126 : vector<4x96xf32>
    %cst_56 = arith.constant 1.000000e+00 : f32
    %128 = vector.broadcast %cst_56 : f32 to vector<4x96xf32>
    %129 = arith.addf %128, %127 : vector<4x96xf32>
    %130 = arith.divf %128, %129 : vector<4x96xf32>
    %131 = vector.extract_strided_slice %124 {offsets = [0, 96], sizes = [4, 32], strides = [1, 1]} : vector<4x128xf32> to vector<4x32xf32>
    %132 = math.tanh %131 : vector<4x32xf32>
    %133 = vector.extract_strided_slice %130 {offsets = [0, 0], sizes = [4, 32], strides = [1, 1]} : vector<4x96xf32> to vector<4x32xf32>
    %134 = vector.extract_strided_slice %130 {offsets = [0, 32], sizes = [4, 32], strides = [1, 1]} : vector<4x96xf32> to vector<4x32xf32>
    %135 = vector.extract_strided_slice %130 {offsets = [0, 64], sizes = [4, 32], strides = [1, 1]} : vector<4x96xf32> to vector<4x32xf32>
    %136 = arith.mulf %134, %84 : vector<4x32xf32>
    %137 = arith.mulf %133, %132 : vector<4x32xf32>
    %138 = arith.addf %136, %137 : vector<4x32xf32>
    %139 = math.tanh %138 : vector<4x32xf32>
    %140 = arith.mulf %135, %139 : vector<4x32xf32>
    %141 = arith.truncf %115 : vector<4x32xf32> to vector<4x32xbf16>
    %c1_57 = arith.constant 1 : index
    %c0_58 = arith.constant 0 : index
    %c0_59 = arith.constant 0 : index
    %142 = vector.load %arg3[%c1_57, %c0_58, %c0_59] : memref<2x32x128xbf16, #tpu.memory_space<vmem>>, vector<1x32x128xbf16>
    %143 = vector.shape_cast %142 : vector<1x32x128xbf16> to vector<32x128xbf16>
    %cst_60 = arith.constant dense<0.000000e+00> : vector<4x128xf32>
    %144 = tpu.matmul %141, %143, %cst_60 {dimension_numbers = #tpu.dot_dimension_numbers<[1], [0], [0], [1], [0, 0, 1, 1], [], []>} : vector<4x32xbf16>, vector<32x128xbf16>, vector<4x128xf32> -> vector<4x128xf32>
    %145 = arith.truncf %140 : vector<4x32xf32> to vector<4x32xbf16>
    %c1_61 = arith.constant 1 : index
    %c0_62 = arith.constant 0 : index
    %c0_63 = arith.constant 0 : index
    %146 = vector.load %arg4[%c1_61, %c0_62, %c0_63] : memref<2x32x128xbf16, #tpu.memory_space<vmem>>, vector<1x32x128xbf16>
    %147 = vector.shape_cast %146 : vector<1x32x128xbf16> to vector<32x128xbf16>
    %cst_64 = arith.constant dense<0.000000e+00> : vector<4x128xf32>
    %148 = tpu.matmul %145, %147, %cst_64 {dimension_numbers = #tpu.dot_dimension_numbers<[1], [0], [0], [1], [0, 0, 1, 1], [], []>} : vector<4x32xbf16>, vector<32x128xbf16>, vector<4x128xf32> -> vector<4x128xf32>
    %149 = arith.addf %144, %148 : vector<4x128xf32>
    %c1_65 = arith.constant 1 : index
    %c0_66 = arith.constant 0 : index
    %c0_67 = arith.constant 0 : index
    %150 = vector.load %arg5[%c1_65, %c0_66, %c0_67] : memref<2x1x128xf32, #tpu.memory_space<vmem>>, vector<1x1x128xf32>
    %151 = vector.shape_cast %150 : vector<1x1x128xf32> to vector<1x128xf32>
    %152 = vector.broadcast %151 : vector<1x128xf32> to vector<4x128xf32>
    %153 = arith.addf %149, %152 : vector<4x128xf32>
    %154 = vector.extract_strided_slice %153 {offsets = [0, 0], sizes = [4, 96], strides = [1, 1]} : vector<4x128xf32> to vector<4x96xf32>
    %155 = arith.negf %154 : vector<4x96xf32>
    %156 = math.exp %155 : vector<4x96xf32>
    %cst_68 = arith.constant 1.000000e+00 : f32
    %157 = vector.broadcast %cst_68 : f32 to vector<4x96xf32>
    %158 = arith.addf %157, %156 : vector<4x96xf32>
    %159 = arith.divf %157, %158 : vector<4x96xf32>
    %160 = vector.extract_strided_slice %153 {offsets = [0, 96], sizes = [4, 32], strides = [1, 1]} : vector<4x128xf32> to vector<4x32xf32>
    %161 = math.tanh %160 : vector<4x32xf32>
    %162 = vector.extract_strided_slice %159 {offsets = [0, 0], sizes = [4, 32], strides = [1, 1]} : vector<4x96xf32> to vector<4x32xf32>
    %163 = vector.extract_strided_slice %159 {offsets = [0, 32], sizes = [4, 32], strides = [1, 1]} : vector<4x96xf32> to vector<4x32xf32>
    %164 = vector.extract_strided_slice %159 {offsets = [0, 64], sizes = [4, 32], strides = [1, 1]} : vector<4x96xf32> to vector<4x32xf32>
    %165 = arith.mulf %163, %113 : vector<4x32xf32>
    %166 = arith.mulf %162, %161 : vector<4x32xf32>
    %167 = arith.addf %165, %166 : vector<4x32xf32>
    %168 = math.tanh %167 : vector<4x32xf32>
    %169 = arith.mulf %164, %168 : vector<4x32xf32>
    %c8 = arith.constant 8 : index
    %c0_69 = arith.constant 0 : index
    %170 = vector.load %arg9[%c8, %c0_69] : memref<32x32xf32, #tpu.memory_space<vmem>>, vector<4x32xf32>
    tpu.vector_store %arg9[%c8, %c0_69], %169 {strides = array<i32>} : memref<32x32xf32, #tpu.memory_space<vmem>>, vector<4x32xf32>,
    %171 = arith.truncf %140 : vector<4x32xf32> to vector<4x32xbf16>
    %c0_70 = arith.constant 0 : index
    %c0_71 = arith.constant 0 : index
    %c0_72 = arith.constant 0 : index
    %172 = vector.load %arg3[%c0_70, %c0_71, %c0_72] : memref<2x32x128xbf16, #tpu.memory_space<vmem>>, vector<1x32x128xbf16>
    %173 = vector.shape_cast %172 : vector<1x32x128xbf16> to vector<32x128xbf16>
    %cst_73 = arith.constant dense<0.000000e+00> : vector<4x128xf32>
    %174 = tpu.matmul %171, %173, %cst_73 {dimension_numbers = #tpu.dot_dimension_numbers<[1], [0], [0], [1], [0, 0, 1, 1], [], []>} : vector<4x32xbf16>, vector<32x128xbf16>, vector<4x128xf32> -> vector<4x128xf32>
    %c0_74 = arith.constant 0 : index
    %c0_75 = arith.constant 0 : index
    %c0_76 = arith.constant 0 : index
    %175 = vector.load %arg5[%c0_74, %c0_75, %c0_76] : memref<2x1x128xf32, #tpu.memory_space<vmem>>, vector<1x1x128xf32>
    %176 = vector.shape_cast %175 : vector<1x1x128xf32> to vector<1x128xf32>
    %177 = vector.broadcast %176 : vector<1x128xf32> to vector<4x128xf32>
    %178 = arith.addf %174, %177 : vector<4x128xf32>
    %179 = vector.extract_strided_slice %178 {offsets = [0, 0], sizes = [4, 96], strides = [1, 1]} : vector<4x128xf32> to vector<4x96xf32>
    %180 = arith.negf %179 : vector<4x96xf32>
    %181 = math.exp %180 : vector<4x96xf32>
    %cst_77 = arith.constant 1.000000e+00 : f32
    %182 = vector.broadcast %cst_77 : f32 to vector<4x96xf32>
    %183 = arith.addf %182, %181 : vector<4x96xf32>
    %184 = arith.divf %182, %183 : vector<4x96xf32>
    %185 = vector.extract_strided_slice %178 {offsets = [0, 96], sizes = [4, 32], strides = [1, 1]} : vector<4x128xf32> to vector<4x32xf32>
    %186 = math.tanh %185 : vector<4x32xf32>
    %187 = vector.extract_strided_slice %184 {offsets = [0, 0], sizes = [4, 32], strides = [1, 1]} : vector<4x96xf32> to vector<4x32xf32>
    %188 = vector.extract_strided_slice %184 {offsets = [0, 32], sizes = [4, 32], strides = [1, 1]} : vector<4x96xf32> to vector<4x32xf32>
    %189 = vector.extract_strided_slice %184 {offsets = [0, 64], sizes = [4, 32], strides = [1, 1]} : vector<4x96xf32> to vector<4x32xf32>
    %190 = arith.mulf %188, %138 : vector<4x32xf32>
    %191 = arith.mulf %187, %186 : vector<4x32xf32>
    %192 = arith.addf %190, %191 : vector<4x32xf32>
    %193 = math.tanh %192 : vector<4x32xf32>
    %194 = arith.mulf %189, %193 : vector<4x32xf32>
    %195 = arith.truncf %169 : vector<4x32xf32> to vector<4x32xbf16>
    %c1_78 = arith.constant 1 : index
    %c0_79 = arith.constant 0 : index
    %c0_80 = arith.constant 0 : index
    %196 = vector.load %arg3[%c1_78, %c0_79, %c0_80] : memref<2x32x128xbf16, #tpu.memory_space<vmem>>, vector<1x32x128xbf16>
    %197 = vector.shape_cast %196 : vector<1x32x128xbf16> to vector<32x128xbf16>
    %cst_81 = arith.constant dense<0.000000e+00> : vector<4x128xf32>
    %198 = tpu.matmul %195, %197, %cst_81 {dimension_numbers = #tpu.dot_dimension_numbers<[1], [0], [0], [1], [0, 0, 1, 1], [], []>} : vector<4x32xbf16>, vector<32x128xbf16>, vector<4x128xf32> -> vector<4x128xf32>
    %199 = arith.truncf %194 : vector<4x32xf32> to vector<4x32xbf16>
    %c1_82 = arith.constant 1 : index
    %c0_83 = arith.constant 0 : index
    %c0_84 = arith.constant 0 : index
    %200 = vector.load %arg4[%c1_82, %c0_83, %c0_84] : memref<2x32x128xbf16, #tpu.memory_space<vmem>>, vector<1x32x128xbf16>
    %201 = vector.shape_cast %200 : vector<1x32x128xbf16> to vector<32x128xbf16>
    %cst_85 = arith.constant dense<0.000000e+00> : vector<4x128xf32>
    %202 = tpu.matmul %199, %201, %cst_85 {dimension_numbers = #tpu.dot_dimension_numbers<[1], [0], [0], [1], [0, 0, 1, 1], [], []>} : vector<4x32xbf16>, vector<32x128xbf16>, vector<4x128xf32> -> vector<4x128xf32>
    %203 = arith.addf %198, %202 : vector<4x128xf32>
    %c1_86 = arith.constant 1 : index
    %c0_87 = arith.constant 0 : index
    %c0_88 = arith.constant 0 : index
    %204 = vector.load %arg5[%c1_86, %c0_87, %c0_88] : memref<2x1x128xf32, #tpu.memory_space<vmem>>, vector<1x1x128xf32>
    %205 = vector.shape_cast %204 : vector<1x1x128xf32> to vector<1x128xf32>
    %206 = vector.broadcast %205 : vector<1x128xf32> to vector<4x128xf32>
    %207 = arith.addf %203, %206 : vector<4x128xf32>
    %208 = vector.extract_strided_slice %207 {offsets = [0, 0], sizes = [4, 96], strides = [1, 1]} : vector<4x128xf32> to vector<4x96xf32>
    %209 = arith.negf %208 : vector<4x96xf32>
    %210 = math.exp %209 : vector<4x96xf32>
    %cst_89 = arith.constant 1.000000e+00 : f32
    %211 = vector.broadcast %cst_89 : f32 to vector<4x96xf32>
    %212 = arith.addf %211, %210 : vector<4x96xf32>
    %213 = arith.divf %211, %212 : vector<4x96xf32>
    %214 = vector.extract_strided_slice %207 {offsets = [0, 96], sizes = [4, 32], strides = [1, 1]} : vector<4x128xf32> to vector<4x32xf32>
    %215 = math.tanh %214 : vector<4x32xf32>
    %216 = vector.extract_strided_slice %213 {offsets = [0, 0], sizes = [4, 32], strides = [1, 1]} : vector<4x96xf32> to vector<4x32xf32>
    %217 = vector.extract_strided_slice %213 {offsets = [0, 32], sizes = [4, 32], strides = [1, 1]} : vector<4x96xf32> to vector<4x32xf32>
    %218 = vector.extract_strided_slice %213 {offsets = [0, 64], sizes = [4, 32], strides = [1, 1]} : vector<4x96xf32> to vector<4x32xf32>
    %219 = arith.mulf %217, %167 : vector<4x32xf32>
    %220 = arith.mulf %216, %215 : vector<4x32xf32>
    %221 = arith.addf %219, %220 : vector<4x32xf32>
    %222 = math.tanh %221 : vector<4x32xf32>
    %223 = arith.mulf %218, %222 : vector<4x32xf32>
    %c12 = arith.constant 12 : index
    %c0_90 = arith.constant 0 : index
    %224 = vector.load %arg9[%c12, %c0_90] : memref<32x32xf32, #tpu.memory_space<vmem>>, vector<4x32xf32>
    tpu.vector_store %arg9[%c12, %c0_90], %223 {strides = array<i32>} : memref<32x32xf32, #tpu.memory_space<vmem>>, vector<4x32xf32>,
    %225 = arith.truncf %194 : vector<4x32xf32> to vector<4x32xbf16>
    %c0_91 = arith.constant 0 : index
    %c0_92 = arith.constant 0 : index
    %c0_93 = arith.constant 0 : index
    %226 = vector.load %arg3[%c0_91, %c0_92, %c0_93] : memref<2x32x128xbf16, #tpu.memory_space<vmem>>, vector<1x32x128xbf16>
    %227 = vector.shape_cast %226 : vector<1x32x128xbf16> to vector<32x128xbf16>
    %cst_94 = arith.constant dense<0.000000e+00> : vector<4x128xf32>
    %228 = tpu.matmul %225, %227, %cst_94 {dimension_numbers = #tpu.dot_dimension_numbers<[1], [0], [0], [1], [0, 0, 1, 1], [], []>} : vector<4x32xbf16>, vector<32x128xbf16>, vector<4x128xf32> -> vector<4x128xf32>
    %c0_95 = arith.constant 0 : index
    %c0_96 = arith.constant 0 : index
    %c0_97 = arith.constant 0 : index
    %229 = vector.load %arg5[%c0_95, %c0_96, %c0_97] : memref<2x1x128xf32, #tpu.memory_space<vmem>>, vector<1x1x128xf32>
    %230 = vector.shape_cast %229 : vector<1x1x128xf32> to vector<1x128xf32>
    %231 = vector.broadcast %230 : vector<1x128xf32> to vector<4x128xf32>
    %232 = arith.addf %228, %231 : vector<4x128xf32>
    %233 = vector.extract_strided_slice %232 {offsets = [0, 0], sizes = [4, 96], strides = [1, 1]} : vector<4x128xf32> to vector<4x96xf32>
    %234 = arith.negf %233 : vector<4x96xf32>
    %235 = math.exp %234 : vector<4x96xf32>
    %cst_98 = arith.constant 1.000000e+00 : f32
    %236 = vector.broadcast %cst_98 : f32 to vector<4x96xf32>
    %237 = arith.addf %236, %235 : vector<4x96xf32>
    %238 = arith.divf %236, %237 : vector<4x96xf32>
    %239 = vector.extract_strided_slice %232 {offsets = [0, 96], sizes = [4, 32], strides = [1, 1]} : vector<4x128xf32> to vector<4x32xf32>
    %240 = math.tanh %239 : vector<4x32xf32>
    %241 = vector.extract_strided_slice %238 {offsets = [0, 0], sizes = [4, 32], strides = [1, 1]} : vector<4x96xf32> to vector<4x32xf32>
    %242 = vector.extract_strided_slice %238 {offsets = [0, 32], sizes = [4, 32], strides = [1, 1]} : vector<4x96xf32> to vector<4x32xf32>
    %243 = vector.extract_strided_slice %238 {offsets = [0, 64], sizes = [4, 32], strides = [1, 1]} : vector<4x96xf32> to vector<4x32xf32>
    %244 = arith.mulf %242, %192 : vector<4x32xf32>
    %245 = arith.mulf %241, %240 : vector<4x32xf32>
    %246 = arith.addf %244, %245 : vector<4x32xf32>
    %247 = math.tanh %246 : vector<4x32xf32>
    %248 = arith.mulf %243, %247 : vector<4x32xf32>
    %249 = arith.truncf %223 : vector<4x32xf32> to vector<4x32xbf16>
    %c1_99 = arith.constant 1 : index
    %c0_100 = arith.constant 0 : index
    %c0_101 = arith.constant 0 : index
    %250 = vector.load %arg3[%c1_99, %c0_100, %c0_101] : memref<2x32x128xbf16, #tpu.memory_space<vmem>>, vector<1x32x128xbf16>
    %251 = vector.shape_cast %250 : vector<1x32x128xbf16> to vector<32x128xbf16>
    %cst_102 = arith.constant dense<0.000000e+00> : vector<4x128xf32>
    %252 = tpu.matmul %249, %251, %cst_102 {dimension_numbers = #tpu.dot_dimension_numbers<[1], [0], [0], [1], [0, 0, 1, 1], [], []>} : vector<4x32xbf16>, vector<32x128xbf16>, vector<4x128xf32> -> vector<4x128xf32>
    %253 = arith.truncf %248 : vector<4x32xf32> to vector<4x32xbf16>
    %c1_103 = arith.constant 1 : index
    %c0_104 = arith.constant 0 : index
    %c0_105 = arith.constant 0 : index
    %254 = vector.load %arg4[%c1_103, %c0_104, %c0_105] : memref<2x32x128xbf16, #tpu.memory_space<vmem>>, vector<1x32x128xbf16>
    %255 = vector.shape_cast %254 : vector<1x32x128xbf16> to vector<32x128xbf16>
    %cst_106 = arith.constant dense<0.000000e+00> : vector<4x128xf32>
    %256 = tpu.matmul %253, %255, %cst_106 {dimension_numbers = #tpu.dot_dimension_numbers<[1], [0], [0], [1], [0, 0, 1, 1], [], []>} : vector<4x32xbf16>, vector<32x128xbf16>, vector<4x128xf32> -> vector<4x128xf32>
    %257 = arith.addf %252, %256 : vector<4x128xf32>
    %c1_107 = arith.constant 1 : index
    %c0_108 = arith.constant 0 : index
    %c0_109 = arith.constant 0 : index
    %258 = vector.load %arg5[%c1_107, %c0_108, %c0_109] : memref<2x1x128xf32, #tpu.memory_space<vmem>>, vector<1x1x128xf32>
    %259 = vector.shape_cast %258 : vector<1x1x128xf32> to vector<1x128xf32>
    %260 = vector.broadcast %259 : vector<1x128xf32> to vector<4x128xf32>
    %261 = arith.addf %257, %260 : vector<4x128xf32>
    %262 = vector.extract_strided_slice %261 {offsets = [0, 0], sizes = [4, 96], strides = [1, 1]} : vector<4x128xf32> to vector<4x96xf32>
    %263 = arith.negf %262 : vector<4x96xf32>
    %264 = math.exp %263 : vector<4x96xf32>
    %cst_110 = arith.constant 1.000000e+00 : f32
    %265 = vector.broadcast %cst_110 : f32 to vector<4x96xf32>
    %266 = arith.addf %265, %264 : vector<4x96xf32>
    %267 = arith.divf %265, %266 : vector<4x96xf32>
    %268 = vector.extract_strided_slice %261 {offsets = [0, 96], sizes = [4, 32], strides = [1, 1]} : vector<4x128xf32> to vector<4x32xf32>
    %269 = math.tanh %268 : vector<4x32xf32>
    %270 = vector.extract_strided_slice %267 {offsets = [0, 0], sizes = [4, 32], strides = [1, 1]} : vector<4x96xf32> to vector<4x32xf32>
    %271 = vector.extract_strided_slice %267 {offsets = [0, 32], sizes = [4, 32], strides = [1, 1]} : vector<4x96xf32> to vector<4x32xf32>
    %272 = vector.extract_strided_slice %267 {offsets = [0, 64], sizes = [4, 32], strides = [1, 1]} : vector<4x96xf32> to vector<4x32xf32>
    %273 = arith.mulf %271, %221 : vector<4x32xf32>
    %274 = arith.mulf %270, %269 : vector<4x32xf32>
    %275 = arith.addf %273, %274 : vector<4x32xf32>
    %276 = math.tanh %275 : vector<4x32xf32>
    %277 = arith.mulf %272, %276 : vector<4x32xf32>
    %c16 = arith.constant 16 : index
    %c0_111 = arith.constant 0 : index
    %278 = vector.load %arg9[%c16, %c0_111] : memref<32x32xf32, #tpu.memory_space<vmem>>, vector<4x32xf32>
    tpu.vector_store %arg9[%c16, %c0_111], %277 {strides = array<i32>} : memref<32x32xf32, #tpu.memory_space<vmem>>, vector<4x32xf32>,
    %279 = arith.truncf %248 : vector<4x32xf32> to vector<4x32xbf16>
    %c0_112 = arith.constant 0 : index
    %c0_113 = arith.constant 0 : index
    %c0_114 = arith.constant 0 : index
    %280 = vector.load %arg3[%c0_112, %c0_113, %c0_114] : memref<2x32x128xbf16, #tpu.memory_space<vmem>>, vector<1x32x128xbf16>
    %281 = vector.shape_cast %280 : vector<1x32x128xbf16> to vector<32x128xbf16>
    %cst_115 = arith.constant dense<0.000000e+00> : vector<4x128xf32>
    %282 = tpu.matmul %279, %281, %cst_115 {dimension_numbers = #tpu.dot_dimension_numbers<[1], [0], [0], [1], [0, 0, 1, 1], [], []>} : vector<4x32xbf16>, vector<32x128xbf16>, vector<4x128xf32> -> vector<4x128xf32>
    %c0_116 = arith.constant 0 : index
    %c0_117 = arith.constant 0 : index
    %c0_118 = arith.constant 0 : index
    %283 = vector.load %arg5[%c0_116, %c0_117, %c0_118] : memref<2x1x128xf32, #tpu.memory_space<vmem>>, vector<1x1x128xf32>
    %284 = vector.shape_cast %283 : vector<1x1x128xf32> to vector<1x128xf32>
    %285 = vector.broadcast %284 : vector<1x128xf32> to vector<4x128xf32>
    %286 = arith.addf %282, %285 : vector<4x128xf32>
    %287 = vector.extract_strided_slice %286 {offsets = [0, 0], sizes = [4, 96], strides = [1, 1]} : vector<4x128xf32> to vector<4x96xf32>
    %288 = arith.negf %287 : vector<4x96xf32>
    %289 = math.exp %288 : vector<4x96xf32>
    %cst_119 = arith.constant 1.000000e+00 : f32
    %290 = vector.broadcast %cst_119 : f32 to vector<4x96xf32>
    %291 = arith.addf %290, %289 : vector<4x96xf32>
    %292 = arith.divf %290, %291 : vector<4x96xf32>
    %293 = vector.extract_strided_slice %286 {offsets = [0, 96], sizes = [4, 32], strides = [1, 1]} : vector<4x128xf32> to vector<4x32xf32>
    %294 = math.tanh %293 : vector<4x32xf32>
    %295 = vector.extract_strided_slice %292 {offsets = [0, 0], sizes = [4, 32], strides = [1, 1]} : vector<4x96xf32> to vector<4x32xf32>
    %296 = vector.extract_strided_slice %292 {offsets = [0, 32], sizes = [4, 32], strides = [1, 1]} : vector<4x96xf32> to vector<4x32xf32>
    %297 = vector.extract_strided_slice %292 {offsets = [0, 64], sizes = [4, 32], strides = [1, 1]} : vector<4x96xf32> to vector<4x32xf32>
    %298 = arith.mulf %296, %246 : vector<4x32xf32>
    %299 = arith.mulf %295, %294 : vector<4x32xf32>
    %300 = arith.addf %298, %299 : vector<4x32xf32>
    %301 = math.tanh %300 : vector<4x32xf32>
    %302 = arith.mulf %297, %301 : vector<4x32xf32>
    %303 = arith.truncf %277 : vector<4x32xf32> to vector<4x32xbf16>
    %c1_120 = arith.constant 1 : index
    %c0_121 = arith.constant 0 : index
    %c0_122 = arith.constant 0 : index
    %304 = vector.load %arg3[%c1_120, %c0_121, %c0_122] : memref<2x32x128xbf16, #tpu.memory_space<vmem>>, vector<1x32x128xbf16>
    %305 = vector.shape_cast %304 : vector<1x32x128xbf16> to vector<32x128xbf16>
    %cst_123 = arith.constant dense<0.000000e+00> : vector<4x128xf32>
    %306 = tpu.matmul %303, %305, %cst_123 {dimension_numbers = #tpu.dot_dimension_numbers<[1], [0], [0], [1], [0, 0, 1, 1], [], []>} : vector<4x32xbf16>, vector<32x128xbf16>, vector<4x128xf32> -> vector<4x128xf32>
    %307 = arith.truncf %302 : vector<4x32xf32> to vector<4x32xbf16>
    %c1_124 = arith.constant 1 : index
    %c0_125 = arith.constant 0 : index
    %c0_126 = arith.constant 0 : index
    %308 = vector.load %arg4[%c1_124, %c0_125, %c0_126] : memref<2x32x128xbf16, #tpu.memory_space<vmem>>, vector<1x32x128xbf16>
    %309 = vector.shape_cast %308 : vector<1x32x128xbf16> to vector<32x128xbf16>
    %cst_127 = arith.constant dense<0.000000e+00> : vector<4x128xf32>
    %310 = tpu.matmul %307, %309, %cst_127 {dimension_numbers = #tpu.dot_dimension_numbers<[1], [0], [0], [1], [0, 0, 1, 1], [], []>} : vector<4x32xbf16>, vector<32x128xbf16>, vector<4x128xf32> -> vector<4x128xf32>
    %311 = arith.addf %306, %310 : vector<4x128xf32>
    %c1_128 = arith.constant 1 : index
    %c0_129 = arith.constant 0 : index
    %c0_130 = arith.constant 0 : index
    %312 = vector.load %arg5[%c1_128, %c0_129, %c0_130] : memref<2x1x128xf32, #tpu.memory_space<vmem>>, vector<1x1x128xf32>
    %313 = vector.shape_cast %312 : vector<1x1x128xf32> to vector<1x128xf32>
    %314 = vector.broadcast %313 : vector<1x128xf32> to vector<4x128xf32>
    %315 = arith.addf %311, %314 : vector<4x128xf32>
    %316 = vector.extract_strided_slice %315 {offsets = [0, 0], sizes = [4, 96], strides = [1, 1]} : vector<4x128xf32> to vector<4x96xf32>
    %317 = arith.negf %316 : vector<4x96xf32>
    %318 = math.exp %317 : vector<4x96xf32>
    %cst_131 = arith.constant 1.000000e+00 : f32
    %319 = vector.broadcast %cst_131 : f32 to vector<4x96xf32>
    %320 = arith.addf %319, %318 : vector<4x96xf32>
    %321 = arith.divf %319, %320 : vector<4x96xf32>
    %322 = vector.extract_strided_slice %315 {offsets = [0, 96], sizes = [4, 32], strides = [1, 1]} : vector<4x128xf32> to vector<4x32xf32>
    %323 = math.tanh %322 : vector<4x32xf32>
    %324 = vector.extract_strided_slice %321 {offsets = [0, 0], sizes = [4, 32], strides = [1, 1]} : vector<4x96xf32> to vector<4x32xf32>
    %325 = vector.extract_strided_slice %321 {offsets = [0, 32], sizes = [4, 32], strides = [1, 1]} : vector<4x96xf32> to vector<4x32xf32>
    %326 = vector.extract_strided_slice %321 {offsets = [0, 64], sizes = [4, 32], strides = [1, 1]} : vector<4x96xf32> to vector<4x32xf32>
    %327 = arith.mulf %325, %275 : vector<4x32xf32>
    %328 = arith.mulf %324, %323 : vector<4x32xf32>
    %329 = arith.addf %327, %328 : vector<4x32xf32>
    %330 = math.tanh %329 : vector<4x32xf32>
    %331 = arith.mulf %326, %330 : vector<4x32xf32>
    %c20 = arith.constant 20 : index
    %c0_132 = arith.constant 0 : index
    %332 = vector.load %arg9[%c20, %c0_132] : memref<32x32xf32, #tpu.memory_space<vmem>>, vector<4x32xf32>
    tpu.vector_store %arg9[%c20, %c0_132], %331 {strides = array<i32>} : memref<32x32xf32, #tpu.memory_space<vmem>>, vector<4x32xf32>,
    %333 = arith.truncf %302 : vector<4x32xf32> to vector<4x32xbf16>
    %c0_133 = arith.constant 0 : index
    %c0_134 = arith.constant 0 : index
    %c0_135 = arith.constant 0 : index
    %334 = vector.load %arg3[%c0_133, %c0_134, %c0_135] : memref<2x32x128xbf16, #tpu.memory_space<vmem>>, vector<1x32x128xbf16>
    %335 = vector.shape_cast %334 : vector<1x32x128xbf16> to vector<32x128xbf16>
    %cst_136 = arith.constant dense<0.000000e+00> : vector<4x128xf32>
    %336 = tpu.matmul %333, %335, %cst_136 {dimension_numbers = #tpu.dot_dimension_numbers<[1], [0], [0], [1], [0, 0, 1, 1], [], []>} : vector<4x32xbf16>, vector<32x128xbf16>, vector<4x128xf32> -> vector<4x128xf32>
    %c0_137 = arith.constant 0 : index
    %c0_138 = arith.constant 0 : index
    %c0_139 = arith.constant 0 : index
    %337 = vector.load %arg5[%c0_137, %c0_138, %c0_139] : memref<2x1x128xf32, #tpu.memory_space<vmem>>, vector<1x1x128xf32>
    %338 = vector.shape_cast %337 : vector<1x1x128xf32> to vector<1x128xf32>
    %339 = vector.broadcast %338 : vector<1x128xf32> to vector<4x128xf32>
    %340 = arith.addf %336, %339 : vector<4x128xf32>
    %341 = vector.extract_strided_slice %340 {offsets = [0, 0], sizes = [4, 96], strides = [1, 1]} : vector<4x128xf32> to vector<4x96xf32>
    %342 = arith.negf %341 : vector<4x96xf32>
    %343 = math.exp %342 : vector<4x96xf32>
    %cst_140 = arith.constant 1.000000e+00 : f32
    %344 = vector.broadcast %cst_140 : f32 to vector<4x96xf32>
    %345 = arith.addf %344, %343 : vector<4x96xf32>
    %346 = arith.divf %344, %345 : vector<4x96xf32>
    %347 = vector.extract_strided_slice %340 {offsets = [0, 96], sizes = [4, 32], strides = [1, 1]} : vector<4x128xf32> to vector<4x32xf32>
    %348 = math.tanh %347 : vector<4x32xf32>
    %349 = vector.extract_strided_slice %346 {offsets = [0, 0], sizes = [4, 32], strides = [1, 1]} : vector<4x96xf32> to vector<4x32xf32>
    %350 = vector.extract_strided_slice %346 {offsets = [0, 32], sizes = [4, 32], strides = [1, 1]} : vector<4x96xf32> to vector<4x32xf32>
    %351 = vector.extract_strided_slice %346 {offsets = [0, 64], sizes = [4, 32], strides = [1, 1]} : vector<4x96xf32> to vector<4x32xf32>
    %352 = arith.mulf %350, %300 : vector<4x32xf32>
    %353 = arith.mulf %349, %348 : vector<4x32xf32>
    %354 = arith.addf %352, %353 : vector<4x32xf32>
    %355 = math.tanh %354 : vector<4x32xf32>
    %356 = arith.mulf %351, %355 : vector<4x32xf32>
    %357 = arith.truncf %331 : vector<4x32xf32> to vector<4x32xbf16>
    %c1_141 = arith.constant 1 : index
    %c0_142 = arith.constant 0 : index
    %c0_143 = arith.constant 0 : index
    %358 = vector.load %arg3[%c1_141, %c0_142, %c0_143] : memref<2x32x128xbf16, #tpu.memory_space<vmem>>, vector<1x32x128xbf16>
    %359 = vector.shape_cast %358 : vector<1x32x128xbf16> to vector<32x128xbf16>
    %cst_144 = arith.constant dense<0.000000e+00> : vector<4x128xf32>
    %360 = tpu.matmul %357, %359, %cst_144 {dimension_numbers = #tpu.dot_dimension_numbers<[1], [0], [0], [1], [0, 0, 1, 1], [], []>} : vector<4x32xbf16>, vector<32x128xbf16>, vector<4x128xf32> -> vector<4x128xf32>
    %361 = arith.truncf %356 : vector<4x32xf32> to vector<4x32xbf16>
    %c1_145 = arith.constant 1 : index
    %c0_146 = arith.constant 0 : index
    %c0_147 = arith.constant 0 : index
    %362 = vector.load %arg4[%c1_145, %c0_146, %c0_147] : memref<2x32x128xbf16, #tpu.memory_space<vmem>>, vector<1x32x128xbf16>
    %363 = vector.shape_cast %362 : vector<1x32x128xbf16> to vector<32x128xbf16>
    %cst_148 = arith.constant dense<0.000000e+00> : vector<4x128xf32>
    %364 = tpu.matmul %361, %363, %cst_148 {dimension_numbers = #tpu.dot_dimension_numbers<[1], [0], [0], [1], [0, 0, 1, 1], [], []>} : vector<4x32xbf16>, vector<32x128xbf16>, vector<4x128xf32> -> vector<4x128xf32>
    %365 = arith.addf %360, %364 : vector<4x128xf32>
    %c1_149 = arith.constant 1 : index
    %c0_150 = arith.constant 0 : index
    %c0_151 = arith.constant 0 : index
    %366 = vector.load %arg5[%c1_149, %c0_150, %c0_151] : memref<2x1x128xf32, #tpu.memory_space<vmem>>, vector<1x1x128xf32>
    %367 = vector.shape_cast %366 : vector<1x1x128xf32> to vector<1x128xf32>
    %368 = vector.broadcast %367 : vector<1x128xf32> to vector<4x128xf32>
    %369 = arith.addf %365, %368 : vector<4x128xf32>
    %370 = vector.extract_strided_slice %369 {offsets = [0, 0], sizes = [4, 96], strides = [1, 1]} : vector<4x128xf32> to vector<4x96xf32>
    %371 = arith.negf %370 : vector<4x96xf32>
    %372 = math.exp %371 : vector<4x96xf32>
    %cst_152 = arith.constant 1.000000e+00 : f32
    %373 = vector.broadcast %cst_152 : f32 to vector<4x96xf32>
    %374 = arith.addf %373, %372 : vector<4x96xf32>
    %375 = arith.divf %373, %374 : vector<4x96xf32>
    %376 = vector.extract_strided_slice %369 {offsets = [0, 96], sizes = [4, 32], strides = [1, 1]} : vector<4x128xf32> to vector<4x32xf32>
    %377 = math.tanh %376 : vector<4x32xf32>
    %378 = vector.extract_strided_slice %375 {offsets = [0, 0], sizes = [4, 32], strides = [1, 1]} : vector<4x96xf32> to vector<4x32xf32>
    %379 = vector.extract_strided_slice %375 {offsets = [0, 32], sizes = [4, 32], strides = [1, 1]} : vector<4x96xf32> to vector<4x32xf32>
    %380 = vector.extract_strided_slice %375 {offsets = [0, 64], sizes = [4, 32], strides = [1, 1]} : vector<4x96xf32> to vector<4x32xf32>
    %381 = arith.mulf %379, %329 : vector<4x32xf32>
    %382 = arith.mulf %378, %377 : vector<4x32xf32>
    %383 = arith.addf %381, %382 : vector<4x32xf32>
    %384 = math.tanh %383 : vector<4x32xf32>
    %385 = arith.mulf %380, %384 : vector<4x32xf32>
    %c24 = arith.constant 24 : index
    %c0_153 = arith.constant 0 : index
    %386 = vector.load %arg9[%c24, %c0_153] : memref<32x32xf32, #tpu.memory_space<vmem>>, vector<4x32xf32>
    tpu.vector_store %arg9[%c24, %c0_153], %385 {strides = array<i32>} : memref<32x32xf32, #tpu.memory_space<vmem>>, vector<4x32xf32>,
    %387 = arith.truncf %356 : vector<4x32xf32> to vector<4x32xbf16>
    %c0_154 = arith.constant 0 : index
    %c0_155 = arith.constant 0 : index
    %c0_156 = arith.constant 0 : index
    %388 = vector.load %arg3[%c0_154, %c0_155, %c0_156] : memref<2x32x128xbf16, #tpu.memory_space<vmem>>, vector<1x32x128xbf16>
    %389 = vector.shape_cast %388 : vector<1x32x128xbf16> to vector<32x128xbf16>
    %cst_157 = arith.constant dense<0.000000e+00> : vector<4x128xf32>
    %390 = tpu.matmul %387, %389, %cst_157 {dimension_numbers = #tpu.dot_dimension_numbers<[1], [0], [0], [1], [0, 0, 1, 1], [], []>} : vector<4x32xbf16>, vector<32x128xbf16>, vector<4x128xf32> -> vector<4x128xf32>
    %c0_158 = arith.constant 0 : index
    %c0_159 = arith.constant 0 : index
    %c0_160 = arith.constant 0 : index
    %391 = vector.load %arg5[%c0_158, %c0_159, %c0_160] : memref<2x1x128xf32, #tpu.memory_space<vmem>>, vector<1x1x128xf32>
    %392 = vector.shape_cast %391 : vector<1x1x128xf32> to vector<1x128xf32>
    %393 = vector.broadcast %392 : vector<1x128xf32> to vector<4x128xf32>
    %394 = arith.addf %390, %393 : vector<4x128xf32>
    %395 = vector.extract_strided_slice %394 {offsets = [0, 0], sizes = [4, 96], strides = [1, 1]} : vector<4x128xf32> to vector<4x96xf32>
    %396 = arith.negf %395 : vector<4x96xf32>
    %397 = math.exp %396 : vector<4x96xf32>
    %cst_161 = arith.constant 1.000000e+00 : f32
    %398 = vector.broadcast %cst_161 : f32 to vector<4x96xf32>
    %399 = arith.addf %398, %397 : vector<4x96xf32>
    %400 = arith.divf %398, %399 : vector<4x96xf32>
    %401 = vector.extract_strided_slice %394 {offsets = [0, 96], sizes = [4, 32], strides = [1, 1]} : vector<4x128xf32> to vector<4x32xf32>
    %402 = math.tanh %401 : vector<4x32xf32>
    %403 = vector.extract_strided_slice %400 {offsets = [0, 0], sizes = [4, 32], strides = [1, 1]} : vector<4x96xf32> to vector<4x32xf32>
    %404 = vector.extract_strided_slice %400 {offsets = [0, 32], sizes = [4, 32], strides = [1, 1]} : vector<4x96xf32> to vector<4x32xf32>
    %405 = vector.extract_strided_slice %400 {offsets = [0, 64], sizes = [4, 32], strides = [1, 1]} : vector<4x96xf32> to vector<4x32xf32>
    %406 = arith.mulf %404, %354 : vector<4x32xf32>
    %407 = arith.mulf %403, %402 : vector<4x32xf32>
    %408 = arith.addf %406, %407 : vector<4x32xf32>
    %409 = math.tanh %408 : vector<4x32xf32>
    %410 = arith.mulf %405, %409 : vector<4x32xf32>
    %411 = arith.truncf %385 : vector<4x32xf32> to vector<4x32xbf16>
    %c1_162 = arith.constant 1 : index
    %c0_163 = arith.constant 0 : index
    %c0_164 = arith.constant 0 : index
    %412 = vector.load %arg3[%c1_162, %c0_163, %c0_164] : memref<2x32x128xbf16, #tpu.memory_space<vmem>>, vector<1x32x128xbf16>
    %413 = vector.shape_cast %412 : vector<1x32x128xbf16> to vector<32x128xbf16>
    %cst_165 = arith.constant dense<0.000000e+00> : vector<4x128xf32>
    %414 = tpu.matmul %411, %413, %cst_165 {dimension_numbers = #tpu.dot_dimension_numbers<[1], [0], [0], [1], [0, 0, 1, 1], [], []>} : vector<4x32xbf16>, vector<32x128xbf16>, vector<4x128xf32> -> vector<4x128xf32>
    %415 = arith.truncf %410 : vector<4x32xf32> to vector<4x32xbf16>
    %c1_166 = arith.constant 1 : index
    %c0_167 = arith.constant 0 : index
    %c0_168 = arith.constant 0 : index
    %416 = vector.load %arg4[%c1_166, %c0_167, %c0_168] : memref<2x32x128xbf16, #tpu.memory_space<vmem>>, vector<1x32x128xbf16>
    %417 = vector.shape_cast %416 : vector<1x32x128xbf16> to vector<32x128xbf16>
    %cst_169 = arith.constant dense<0.000000e+00> : vector<4x128xf32>
    %418 = tpu.matmul %415, %417, %cst_169 {dimension_numbers = #tpu.dot_dimension_numbers<[1], [0], [0], [1], [0, 0, 1, 1], [], []>} : vector<4x32xbf16>, vector<32x128xbf16>, vector<4x128xf32> -> vector<4x128xf32>
    %419 = arith.addf %414, %418 : vector<4x128xf32>
    %c1_170 = arith.constant 1 : index
    %c0_171 = arith.constant 0 : index
    %c0_172 = arith.constant 0 : index
    %420 = vector.load %arg5[%c1_170, %c0_171, %c0_172] : memref<2x1x128xf32, #tpu.memory_space<vmem>>, vector<1x1x128xf32>
    %421 = vector.shape_cast %420 : vector<1x1x128xf32> to vector<1x128xf32>
    %422 = vector.broadcast %421 : vector<1x128xf32> to vector<4x128xf32>
    %423 = arith.addf %419, %422 : vector<4x128xf32>
    %424 = vector.extract_strided_slice %423 {offsets = [0, 0], sizes = [4, 96], strides = [1, 1]} : vector<4x128xf32> to vector<4x96xf32>
    %425 = arith.negf %424 : vector<4x96xf32>
    %426 = math.exp %425 : vector<4x96xf32>
    %cst_173 = arith.constant 1.000000e+00 : f32
    %427 = vector.broadcast %cst_173 : f32 to vector<4x96xf32>
    %428 = arith.addf %427, %426 : vector<4x96xf32>
    %429 = arith.divf %427, %428 : vector<4x96xf32>
    %430 = vector.extract_strided_slice %423 {offsets = [0, 96], sizes = [4, 32], strides = [1, 1]} : vector<4x128xf32> to vector<4x32xf32>
    %431 = math.tanh %430 : vector<4x32xf32>
    %432 = vector.extract_strided_slice %429 {offsets = [0, 0], sizes = [4, 32], strides = [1, 1]} : vector<4x96xf32> to vector<4x32xf32>
    %433 = vector.extract_strided_slice %429 {offsets = [0, 32], sizes = [4, 32], strides = [1, 1]} : vector<4x96xf32> to vector<4x32xf32>
    %434 = vector.extract_strided_slice %429 {offsets = [0, 64], sizes = [4, 32], strides = [1, 1]} : vector<4x96xf32> to vector<4x32xf32>
    %435 = arith.mulf %433, %383 : vector<4x32xf32>
    %436 = arith.mulf %432, %431 : vector<4x32xf32>
    %437 = arith.addf %435, %436 : vector<4x32xf32>
    %438 = math.tanh %437 : vector<4x32xf32>
    %439 = arith.mulf %434, %438 : vector<4x32xf32>
    %c28 = arith.constant 28 : index
    %c0_174 = arith.constant 0 : index
    %440 = vector.load %arg9[%c28, %c0_174] : memref<32x32xf32, #tpu.memory_space<vmem>>, vector<4x32xf32>
    tpu.vector_store %arg9[%c28, %c0_174], %439 {strides = array<i32>} : memref<32x32xf32, #tpu.memory_space<vmem>>, vector<4x32xf32>,
    %c0_175 = arith.constant 0 : index
    %c0_176 = arith.constant 0 : index
    %441 = vector.load %arg9[%c0_175, %c0_176] : memref<32x32xf32, #tpu.memory_space<vmem>>, vector<32x32xf32>
    %442 = arith.truncf %441 : vector<32x32xf32> to vector<32x32xbf16>
    %c0_177 = arith.constant 0 : index
    %c0_178 = arith.constant 0 : index
    %443 = vector.load %arg6[%c0_177, %c0_178] : memref<32x2xbf16, #tpu.memory_space<vmem>>, vector<32x2xbf16>
    %cst_179 = arith.constant dense<0.000000e+00> : vector<32x2xf32>
    %444 = tpu.matmul %442, %443, %cst_179 {dimension_numbers = #tpu.dot_dimension_numbers<[1], [0], [0], [1], [0, 0, 1, 1], [], []>} : vector<32x32xbf16>, vector<32x2xbf16>, vector<32x2xf32> -> vector<32x2xf32>
    %c0_180 = arith.constant 0 : index
    %c0_181 = arith.constant 0 : index
    %445 = vector.load %arg7[%c0_180, %c0_181] : memref<1x2xf32, #tpu.memory_space<vmem>>, vector<1x2xf32>
    %446 = vector.broadcast %445 : vector<1x2xf32> to vector<32x2xf32>
    %447 = arith.addf %444, %446 : vector<32x2xf32>
    %c0_182 = arith.constant 0 : index
    %c0_183 = arith.constant 0 : index
    %448 = vector.load %arg8[%c0_182, %c0_183] : memref<32x2xf32, #tpu.memory_space<vmem>>, vector<32x2xf32>
    tpu.vector_store %arg8[%c0_182, %c0_183], %447 {strides = array<i32>} : memref<32x2xf32, #tpu.memory_space<vmem>>, vector<32x2xf32>,
    return
  }
}

</mosaic_0001>

<bundles_post_ra>
// kernel: decoder_forward.1
= control target key start
LH: loop header
LB: loop body
LE: loop exit
PB: predicated region body
PF: predicated region fallthrough
CT: control target
= control target key end

     0   :  { %v2837_v0 = vmov 0.0   ;;  %vm2838_vm0 = vmmov 0   ;;  %vm47_vm1 = vcmask 130048   ;;  %vm115_vm2 = vcmask 261120   ;;  %s2839_s18 = smov 32   ;;  %s2840_s23 = smov 64   ;;  %s3382_s1 = inlined_call_operand.vmem [shape: bf16[16,32], index: 1, kind: input, shape index: {}]   ;;  %s3383_s0 = inlined_call_operand.vmem [shape: f32[4,16], index: 0, kind: input, shape index: {}]   ;;  %s3384_s3 = inlined_call_operand.vmem [shape: bf16[2,32,128], index: 3, kind: input, shape index: {}]   ;;  %s3385_s2 = inlined_call_operand.vmem [shape: f32[1,32], index: 2, kind: input, shape index: {}]   ;;  %s3386_s5 = inlined_call_operand.vmem [shape: f32[2,1,128], index: 5, kind: input, shape index: {}]   ;;  %s3387_s4 = inlined_call_operand.vmem [shape: bf16[2,32,128], index: 4, kind: input, shape index: {}]   ;;  %s3388_s6 = inlined_call_operand.vmem [shape: bf16[32,2], index: 6, kind: input, shape index: {}]   ;;  %s3389_s7 = inlined_call_operand.vmem [shape: f32[1,2], index: 7, kind: input, shape index: {}]   ;;  %s3390_s8 = inlined_call_operand.vmem [shape: f32[32,2], index: 8, kind: output, shape index: {}]  }
   0x1   :  { %2448 = vmatprep.subr.bf16.mxu0 %v2837_v0  ;;  %v2658_v1 = vld [vmem:[%s3382_s1] sm:$0xff]   ;;  %2450 = vmatprep.mubr.msk.bf16.mxu0 %vm2838_vm0, %v2837_v0  ;;  %v2659_v4 = vld [vmem:[%s3384_s3 + $0x8] sm:$0xff]   ;;  %v2661_v10 = vld [vmem:[%s3384_s3 + $0x18] sm:$0xff]   ;;  %vm341_vm3 = vcmask 257024   ;;  %vm2177_vm4 = vcmask 15360  }
   0x2   :  { %v30_v2 = vld [vmem:[%s3383_s0] sm:$0xf]  ;;  %2454 = vmatprep.subr.bf16.mxu1 %v2837_v0  ;;  %2458 = vmatprep.mubr.msk.bf16.mxu1 %vm2838_vm0, %v2837_v0  ;;  %v2662_v14 = vld [vmem:[%s3384_s3 + $0x10] sm:$0xff]   ;;  %v2663_v35 = vld [vmem:[%s3387_s4 + $0x18] sm:$0xff]  }
   0x3   :  { %2449 = vmatpush3.bf16.msra.mxu0 %v2658_v1  ;;  %v31_v3 = vpack.c.bf16 %v30_v2, %v30_v2  ;;  %2455 = vmatpush3.bf16.msra.mxu1 %v2659_v4  ;;  %v2660_v5 = vld [vmem:[%s3384_s3] sm:$0xff]   ;;  %v2664_v36 = vld [vmem:[%s3387_s4 + $0x10] sm:$0xff]   ;;  %v2665_v41 = vld [vmem:[%s3384_s3 + $0x8] sm:$0xff]  }
   0x4   :  { %2462 = vmatprep.subr.bf16.mxu0 %v2837_v0  ;;  %2456 = vmatprep.subr.bf16.mxu1 %v2837_v0  ;;  %v2186_v6 = vld [vmem:[%s3385_s2] ss:$0 sm:$0xff]  ;;  %v2964_v45 = vld [vmem:[%s3386_s5 + $0x1] ss:$0 sm:$0xff] }
   0x5   :  { %v2929_v15 = vld [vmem:[%s3386_s5] ss:$0 sm:$0xff] }
   0x6   :  { %2451 = vmatmul.mubr.msk.bf16.vlgmr.msra.gmra.mxu0 %vm47_vm1, %v31_v3  ;;  %v2666_v43 = vld [vmem:[%s3384_s3] sm:$0xff]  }
   0x7   :  { %2466 = vmatprep.mubr.msk.bf16.mxu0 %vm2838_vm0, %v2837_v0  ;;  %2457 = vmatpush3.bf16.msra.mxu1 %v2660_v5 }
   0x8   :  { %2470 = vmatprep.subr.bf16.mxu1 %v2837_v0  ;;  %2463 = vmatpush3.bf16.msra.mxu0 %v2663_v35 }
   0x9   :  { %2464 = vmatprep.subr.bf16.mxu0 %v2837_v0 }
   0xc   :  { %2465 = vmatpush3.bf16.msra.mxu0 %v2664_v36 }
   0xd   :  { %2478 = vmatprep.subr.bf16.mxu0 %v2837_v0 }
  0xc6   :  { %v85_v7 = vpop.f32.mrf.mxu0 }
  0xc7   :  { %v86_v8 = vadd.f32 %v2186_v6, %v85_v7 }
  0xc8   :  { %v2452_v9 = vpop.f32.mrf.mxu0 }
  0xc9   :  { %v91_v11 = vpack.c.bf16 %v86_v8, %v86_v8 }
  0xca   :  { %v88_v12 = vpop.f32.mrf.mxu0 }
  0xcb   :  { %2459 = vmatmul.mubr.msk.bf16.vlgmr.msra.gmra.mxu1 %vm115_vm2, %v91_v11 }
  0xcc   :  { %v2453_v13 = vpop.f32.mrf.mxu0  ;;  %2471 = vmatpush3.bf16.msra.mxu1 %v2661_v10  ;;  %2474 = vmatprep.mubr.msk.bf16.mxu1 %vm2838_vm0, %v2837_v0 }
  0xcd   :  { %2472 = vmatprep.subr.bf16.mxu1 %v2837_v0  ;;  %v2667_v13 = vld [vmem:[%s3384_s3 + $0x18] sm:$0xff]  }
  0xd0   :  { %2473 = vmatpush3.bf16.msra.mxu1 %v2662_v14  ;;  %v2669_v14 = vld [vmem:[%s3387_s4 + $0x18] sm:$0xff]  }
  0xd1   :  { %2486 = vmatprep.subr.bf16.mxu1 %v2837_v0 }
  0xd3   :  { %2475 = vmatmul.mubr.msk.bf16.vlgmr.msra.gmra.mxu1 %vm115_vm2, %v91_v11 }
  0xd4   :  { %2490 = vmatprep.mubr.msk.bf16.mxu1 %vm2838_vm0, %v2837_v0  ;;  %2487 = vmatpush3.bf16.msra.mxu1 %v2669_v14 }
  0xd5   :  { %2488 = vmatprep.subr.bf16.mxu1 %v2837_v0 }
 0x18b   :  { %v153_v16 = vpop.f32.mrf.mxu1 }
 0x18c   :  { %v154_v17 = vadd.f32 %v2929_v15, %v153_v16 }
 0x18d   :  { %v2460_v18 = vpop.f32.mrf.mxu1 }
 0x18e   :  { %2709 = vtanh.f32 %v154_v17  ;;  %v2193_v26 = vmul.f32 -1.442695, %v154_v17  ;;  %v2668_v17 = vld [vmem:[%s3384_s3 + $0x10] sm:$0xff]  }
 0x18f   :  { %v156_v19 = vpop.f32.mrf.mxu1 }
 0x190   :  { %2711 = vpow2.f32 %v2193_v26  ;;  %v2670_v19 = vld [vmem:[%s3387_s4 + $0x10] sm:$0xff]  }
 0x191   :  { %v2461_v20 = vpop.f32.mrf.mxu1  ;;  %2489 = vmatpush3.bf16.msra.mxu1 %v2670_v19  ;;  %v2678_v19 = vld [vmem:[%s3384_s3] sm:$0xff]  }
 0x192   :  { %2502 = vmatprep.subr.bf16.mxu1 %v2837_v0 }
 0x193   :  { %v298_v21 = vpop.f32.mrf.mxu1 }
 0x195   :  { %v2476_v22 = vpop.f32.mrf.mxu1 }
 0x197   :  { %v301_v23 = vpop.f32.mrf.mxu1 }
 0x199   :  { %v2477_v24 = vpop.f32.mrf.mxu1 }
 0x19b   :  { %v2710_v25 = vpop.eup %2709 }
 0x19c   :  { %168 = vrot.lane.b32.xlu0 %v2710_v25, %s2839_s18 }
 0x19d   :  { %v2712_v27 = vpop.eup %2711 }
 0x19e   :  { %v162_v28 = vadd.f32 1.0, %v2712_v27  ;;  %v2671_v27 = vld [vmem:[%s3384_s3 + $0x8] sm:$0xff]  }
 0x1a0   :  { %2713 = vrcp.f32 %v162_v28 }
 0x1ad   :  { %v2714_v29 = vpop.eup %2713 }
 0x1ae   :  { %v166_v32 = vmul.f32 0.0, %v2714_v29 }
 0x20e   :  { %v169_v30 = vpop.permute.xlu0 %168 }
 0x20f   :  { %v171_v31 = vmul.f32 %v2714_v29, %v169_v30 }
 0x211   :  { %173 = vrot.lane.b32.xlu0 %v171_v31, %s2839_s18 }
 0x283   :  { %v174_v33 = vpop.permute.xlu0 %173 }
 0x284   :  { %v2934_v34 = vadd.f32 %v174_v33, %v166_v32 }
 0x286   :  { %2715 = vtanh.f32 %v2934_v34 }
 0x293   :  { %v2716_v37 = vpop.eup %2715 }
 0x294   :  { %179 = vrot.lane.b32.xlu1 %v2716_v37, %s2839_s18 }
 0x306   :  { %v180_v38 = vpop.permute.xlu1 %179 }
 0x307   :  { %v182_v39 = vmul.f32 %v2714_v29, %v180_v38  ;;  %v2672_v29 = vld [vmem:[%s3384_s3] sm:$0xff]  }
 0x309   :  { %v188_v40 = vpack.c.bf16 %v182_v39, %v182_v39 }
 0x30b   :  { %195 = vrot.lane.b32.xlu1 %v188_v40, %s2840_s23 }
 0x37d   :  { %v196_v42 = vpop.permute.xlu1 %195 }
 0x37e   :  { %2467 = vmatmul.mubr.msk.bf16.vlgmr.msra.gmra.mxu0 %vm115_vm2, %v196_v42 }
 0x37f   :  { %2479 = vmatpush3.bf16.msra.mxu0 %v2665_v41  ;;  %2482 = vmatprep.mubr.msk.bf16.mxu0 %vm2838_vm0, %v2837_v0 }
 0x380   :  { %2480 = vmatprep.subr.bf16.mxu0 %v2837_v0 }
 0x383   :  { %2481 = vmatpush3.bf16.msra.mxu0 %v2666_v43 }
 0x384   :  { %2494 = vmatprep.subr.bf16.mxu0 %v2837_v0 }
 0x386   :  { %2483 = vmatmul.mubr.msk.bf16.vlgmr.msra.gmra.mxu0 %vm115_vm2, %v196_v42 }
 0x387   :  { %2498 = vmatprep.mubr.msk.bf16.mxu0 %vm2838_vm0, %v2837_v0  ;;  %2495 = vmatpush3.bf16.msra.mxu0 %v2667_v13 }
 0x388   :  { %2496 = vmatprep.subr.bf16.mxu0 %v2837_v0 }
 0x38b   :  { %2497 = vmatpush3.bf16.msra.mxu0 %v2668_v17  ;;  %v2677_v17 = vld [vmem:[%s3384_s3 + $0x8] sm:$0xff]  }
 0x38c   :  { %2510 = vmatprep.subr.bf16.mxu0 %v2837_v0 }
 0x43e   :  { %v246_v44 = vpop.f32.mrf.mxu0 }
 0x43f   :  { %v299_v46 = vadd.f32 %v298_v21, %v246_v44 }
 0x440   :  { %v2468_v47 = vpop.f32.mrf.mxu0 }
 0x441   :  { %v312_v48 = vadd.f32 %v2964_v45, %v299_v46 }
 0x442   :  { %v249_v49 = vpop.f32.mrf.mxu0 }
 0x443   :  { %2717 = vtanh.f32 %v312_v48  ;;  %v2210_v58 = vmul.f32 -1.442695, %v312_v48 }
 0x444   :  { %v2469_v50 = vpop.f32.mrf.mxu0 }
 0x446   :  { %v400_v51 = vpop.f32.mrf.mxu0 }
 0x447   :  { %v401_v52 = vadd.f32 %v2929_v15, %v400_v51 }
 0x448   :  { %v2484_v53 = vpop.f32.mrf.mxu0 }
 0x449   :  { %2719 = vtanh.f32 %v401_v52  ;;  %v2215_v59 = vmul.f32 -1.442695, %v401_v52 }
 0x44a   :  { %v403_v54 = vpop.f32.mrf.mxu0  ;;  %2721 = vpow2.f32 %v2210_v58 }
 0x44b   :  { %2723 = vpow2.f32 %v2215_v59 }
 0x44c   :  { %v2485_v55 = vpop.f32.mrf.mxu0 }
 0x450   :  { %v2718_v56 = vpop.eup %2717 }
 0x451   :  { %322 = vrot.lane.b32.xlu1 %v2718_v56, %s2839_s18 }
 0x456   :  { %v2720_v57 = vpop.eup %2719 }
 0x457   :  { %415 = vrot.lane.b32.xlu0 %v2720_v57, %s2839_s18  ;;  %v2722_v60 = vpop.eup %2721 }
 0x458   :  { %v316_v61 = vadd.f32 1.0, %v2722_v60  ;;  %v2724_v62 = vpop.eup %2723 }
 0x459   :  { %v409_v63 = vadd.f32 1.0, %v2724_v62 }
 0x45a   :  { %2725 = vrcp.f32 %v316_v61 }
 0x45b   :  { %2727 = vrcp.f32 %v409_v63 }
 0x467   :  { %v2726_v1 = vpop.eup %2725 }
 0x468   :  { %v2728_v4 = vpop.eup %2727  ;;  %v320_v7 = vmul.f32 0.0, %v2726_v1 }
 0x469   :  { %v413_v10 = vmul.f32 %v2728_v4, %v2934_v34 }
 0x4c3   :  { %v323_v2 = vpop.permute.xlu1 %322 }
 0x4c4   :  { %v325_v3 = vmul.f32 %v2726_v1, %v323_v2 }
 0x4c6   :  { %327 = vrot.lane.b32.xlu1 %v325_v3, %s2839_s18  ;;  %v2673_v3 = vld [vmem:[%s3384_s3 + $0x18] sm:$0xff]  }
 0x4c9   :  { %v416_v5 = vpop.permute.xlu0 %415 }
 0x4ca   :  { %v418_v6 = vmul.f32 %v2728_v4, %v416_v5 }
 0x4cc   :  { %420 = vrot.lane.b32.xlu0 %v418_v6, %s2839_s18  ;;  %v2674_v6 = vld [vmem:[%s3384_s3 + $0x10] sm:$0xff]  }
 0x538   :  { %v328_v8 = vpop.permute.xlu1 %327 }
 0x539   :  { %v2972_v9 = vadd.f32 %v328_v8, %v320_v7  ;;  %v2676_v8 = vld [vmem:[%s3387_s4 + $0x10] sm:$0xff]  }
 0x53b   :  { %2729 = vtanh.f32 %v2972_v9 }
 0x53e   :  { %v421_v11 = vpop.permute.xlu0 %420 }
 0x53f   :  { %v2976_v12 = vadd.f32 %v421_v11, %v413_v10 }
 0x541   :  { %2731 = vtanh.f32 %v2976_v12 }
 0x548   :  { %v2730_v16 = vpop.eup %2729 }
 0x549   :  { %333 = vrot.lane.b32.xlu1 %v2730_v16, %s2839_s18 }
 0x54e   :  { %v2732_v18 = vpop.eup %2731 }
 0x54f   :  { %426 = vrot.lane.b32.xlu0 %v2732_v18, %s2839_s18 }
 0x5bb   :  { %v334_v20 = vpop.permute.xlu1 %333 }
 0x5bc   :  { %v2997_v21 = vmul.f32 %v2726_v1, %v334_v20 }
 0x5be   :  { %v430_v22 = vpack.c.bf16 %v2997_v21, %v2997_v21 }
 0x5c0   :  { %499 = vrot.lane.b32.xlu1 %v430_v22, %s2840_s23 }
 0x5c1   :  { %v427_v23 = vpop.permute.xlu0 %426 }
 0x5c2   :  { %v429_v24 = vmul.f32 %v2728_v4, %v427_v23  ;;  %v2675_v4 = vld [vmem:[%s3387_s4 + $0x18] sm:$0xff]  }
 0x5c4   :  { %v435_v25 = vpack.c.bf16 %v429_v24, %v429_v24 }
 0x5c6   :  { %441 = vrot.lane.b32.xlu0 %v435_v25, %s2840_s23 }
 0x632   :  { %v500_v26 = vpop.permute.xlu1 %499 }
 0x633   :  { %2499 = vmatmul.mubr.msk.bf16.vlgmr.msra.gmra.mxu0 %vm115_vm2, %v500_v26 }
 0x634   :  { %2514 = vmatprep.mubr.msk.bf16.mxu0 %vm2838_vm0, %v2837_v0  ;;  %2511 = vmatpush3.bf16.msra.mxu0 %v2675_v4 }
 0x635   :  { %2512 = vmatprep.subr.bf16.mxu0 %v2837_v0 }
 0x638   :  { %v442_v28 = vpop.permute.xlu0 %441  ;;  %2513 = vmatpush3.bf16.msra.mxu0 %v2676_v8 }
 0x639   :  { %2491 = vmatmul.mubr.msk.bf16.vlgmr.msra.gmra.mxu1 %vm115_vm2, %v442_v28  ;;  %2526 = vmatprep.subr.bf16.mxu0 %v2837_v0 }
 0x63a   :  { %2503 = vmatpush3.bf16.msra.mxu1 %v2671_v27  ;;  %2506 = vmatprep.mubr.msk.bf16.mxu1 %vm2838_vm0, %v2837_v0 }
 0x63b   :  { %2504 = vmatprep.subr.bf16.mxu1 %v2837_v0 }
 0x63e   :  { %2505 = vmatpush3.bf16.msra.mxu1 %v2672_v29 }
 0x63f   :  { %2518 = vmatprep.subr.bf16.mxu1 %v2837_v0 }
 0x641   :  { %2507 = vmatmul.mubr.msk.bf16.vlgmr.msra.gmra.mxu1 %vm115_vm2, %v442_v28 }
 0x642   :  { %2522 = vmatprep.mubr.msk.bf16.mxu1 %vm2838_vm0, %v2837_v0  ;;  %2519 = vmatpush3.bf16.msra.mxu1 %v2673_v3 }
 0x643   :  { %2520 = vmatprep.subr.bf16.mxu1 %v2837_v0 }
 0x646   :  { %2521 = vmatpush3.bf16.msra.mxu1 %v2674_v6 }
 0x647   :  { %2534 = vmatprep.subr.bf16.mxu1 %v2837_v0 }
 0x6f3   :  { %v550_v30 = vpop.f32.mrf.mxu0 }
 0x6f5   :  { %v2500_v31 = vpop.f32.mrf.mxu0 }
 0x6f7   :  { %v553_v32 = vpop.f32.mrf.mxu0 }
 0x6f9   :  { %v492_v33 = vpop.f32.mrf.mxu1  ;;  %v2501_v34 = vpop.f32.mrf.mxu0 }
 0x6fa   :  { %v551_v35 = vadd.f32 %v550_v30, %v492_v33 }
 0x6fb   :  { %v2492_v36 = vpop.f32.mrf.mxu1 }
 0x6fc   :  { %v563_v37 = vadd.f32 %v2964_v45, %v551_v35 }
 0x6fd   :  { %v495_v38 = vpop.f32.mrf.mxu1 }
 0x6fe   :  { %2733 = vtanh.f32 %v563_v37  ;;  %v2232_v48 = vmul.f32 -1.442695, %v563_v37 }
 0x6ff   :  { %v2493_v39 = vpop.f32.mrf.mxu1 }
 0x701   :  { %v650_v40 = vpop.f32.mrf.mxu1 }
 0x702   :  { %v651_v41 = vadd.f32 %v2929_v15, %v650_v40 }
 0x703   :  { %v2508_v42 = vpop.f32.mrf.mxu1 }
 0x704   :  { %2735 = vtanh.f32 %v651_v41  ;;  %v2237_v49 = vmul.f32 -1.442695, %v651_v41 }
 0x705   :  { %v653_v43 = vpop.f32.mrf.mxu1  ;;  %2737 = vpow2.f32 %v2232_v48 }
 0x706   :  { %2739 = vpow2.f32 %v2237_v49 }
 0x707   :  { %v2509_v44 = vpop.f32.mrf.mxu1 }
 0x70b   :  { %v2734_v46 = vpop.eup %2733 }
 0x70c   :  { %573 = vrot.lane.b32.xlu1 %v2734_v46, %s2839_s18 }
 0x711   :  { %v2736_v47 = vpop.eup %2735 }
 0x712   :  { %665 = vrot.lane.b32.xlu0 %v2736_v47, %s2839_s18  ;;  %v2738_v50 = vpop.eup %2737 }
 0x713   :  { %v567_v51 = vadd.f32 1.0, %v2738_v50  ;;  %v2740_v52 = vpop.eup %2739 }
 0x714   :  { %v659_v53 = vadd.f32 1.0, %v2740_v52 }
 0x715   :  { %2741 = vrcp.f32 %v567_v51 }
 0x716   :  { %2743 = vrcp.f32 %v659_v53 }
 0x722   :  { %v2742_v54 = vpop.eup %2741 }
 0x723   :  { %v2744_v57 = vpop.eup %2743  ;;  %v571_v60 = vmul.f32 %v2742_v54, %v2972_v9 }
 0x724   :  { %v663_v63 = vmul.f32 %v2744_v57, %v2976_v12 }
 0x77e   :  { %v574_v55 = vpop.permute.xlu1 %573 }
 0x77f   :  { %v576_v56 = vmul.f32 %v2742_v54, %v574_v55 }
 0x781   :  { %578 = vrot.lane.b32.xlu1 %v576_v56, %s2839_s18 }
 0x784   :  { %v666_v58 = vpop.permute.xlu0 %665 }
 0x785   :  { %v668_v59 = vmul.f32 %v2744_v57, %v666_v58  ;;  %v2681_v58 = vld [vmem:[%s3387_s4 + $0x18] sm:$0xff]  }
 0x787   :  { %670 = vrot.lane.b32.xlu0 %v668_v59, %s2839_s18 }
 0x7f3   :  { %v579_v61 = vpop.permute.xlu1 %578 }
 0x7f4   :  { %v3027_v62 = vadd.f32 %v579_v61, %v571_v60  ;;  %v2680_v60 = vld [vmem:[%s3384_s3 + $0x10] sm:$0xff]  }
 0x7f6   :  { %2745 = vtanh.f32 %v3027_v62 }
 0x7f9   :  { %v671_v1 = vpop.permute.xlu0 %670 }
 0x7fa   :  { %v3031_v2 = vadd.f32 %v671_v1, %v663_v63 }
 0x7fc   :  { %2747 = vtanh.f32 %v3031_v2 }
 0x803   :  { %v2746_v5 = vpop.eup %2745 }
 0x804   :  { %584 = vrot.lane.b32.xlu1 %v2746_v5, %s2839_s18 }
 0x809   :  { %v2748_v7 = vpop.eup %2747 }
 0x80a   :  { %676 = vrot.lane.b32.xlu0 %v2748_v7, %s2839_s18  ;;  %v2683_v7 = vld [vmem:[%s3384_s3 + $0x8] sm:$0xff]  }
 0x876   :  { %v585_v9 = vpop.permute.xlu1 %584 }
 0x877   :  { %v3052_v10 = vmul.f32 %v2742_v54, %v585_v9  ;;  %v2684_v9 = vld [vmem:[%s3384_s3] sm:$0xff]  }
 0x879   :  { %v680_v11 = vpack.c.bf16 %v3052_v10, %v3052_v10 }
 0x87b   :  { %749 = vrot.lane.b32.xlu1 %v680_v11, %s2840_s23 }
 0x87c   :  { %v677_v12 = vpop.permute.xlu0 %676 }
 0x87d   :  { %v679_v13 = vmul.f32 %v2744_v57, %v677_v12  ;;  %v2679_v57 = vld [vmem:[%s3384_s3 + $0x18] sm:$0xff]  }
 0x87f   :  { %v685_v14 = vpack.c.bf16 %v679_v13, %v679_v13 }
 0x881   :  { %691 = vrot.lane.b32.xlu0 %v685_v14, %s2840_s23 }
 0x8ed   :  { %v750_v16 = vpop.permute.xlu1 %749 }
 0x8ee   :  { %2523 = vmatmul.mubr.msk.bf16.vlgmr.msra.gmra.mxu1 %vm115_vm2, %v750_v16 }
 0x8ef   :  { %2538 = vmatprep.mubr.msk.bf16.mxu1 %vm2838_vm0, %v2837_v0  ;;  %2535 = vmatpush3.bf16.msra.mxu1 %v2681_v58 }
 0x8f0   :  { %2536 = vmatprep.subr.bf16.mxu1 %v2837_v0 }
 0x8f3   :  { %v692_v18 = vpop.permute.xlu0 %691 }
 0x8f4   :  { %2515 = vmatmul.mubr.msk.bf16.vlgmr.msra.gmra.mxu0 %vm115_vm2, %v692_v18 }
 0x8f5   :  { %2527 = vmatpush3.bf16.msra.mxu0 %v2677_v17  ;;  %2530 = vmatprep.mubr.msk.bf16.mxu0 %vm2838_vm0, %v2837_v0 }
 0x8f6   :  { %2528 = vmatprep.subr.bf16.mxu0 %v2837_v0 }
 0x8f9   :  { %2529 = vmatpush3.bf16.msra.mxu0 %v2678_v19 }
 0x8fa   :  { %2542 = vmatprep.subr.bf16.mxu0 %v2837_v0 }
 0x8fc   :  { %2531 = vmatmul.mubr.msk.bf16.vlgmr.msra.gmra.mxu0 %vm115_vm2, %v692_v18 }
 0x8fd   :  { %2546 = vmatprep.mubr.msk.bf16.mxu0 %vm2838_vm0, %v2837_v0  ;;  %2543 = vmatpush3.bf16.msra.mxu0 %v2679_v57 }
 0x8fe   :  { %2544 = vmatprep.subr.bf16.mxu0 %v2837_v0 }
 0x901   :  { %2545 = vmatpush3.bf16.msra.mxu0 %v2680_v60 }
 0x902   :  { %2558 = vmatprep.subr.bf16.mxu0 %v2837_v0 }
 0x9ae   :  { %v800_v20 = vpop.f32.mrf.mxu1 }
 0x9b0   :  { %v2524_v22 = vpop.f32.mrf.mxu1 }
 0x9b2   :  { %v803_v23 = vpop.f32.mrf.mxu1 }
 0x9b4   :  { %v742_v24 = vpop.f32.mrf.mxu0  ;;  %v2525_v25 = vpop.f32.mrf.mxu1 }
 0x9b5   :  { %v801_v26 = vadd.f32 %v800_v20, %v742_v24 }
 0x9b6   :  { %v2516_v27 = vpop.f32.mrf.mxu0 }
 0x9b7   :  { %v813_v28 = vadd.f32 %v2964_v45, %v801_v26 }
 0x9b8   :  { %v745_v29 = vpop.f32.mrf.mxu0 }
 0x9b9   :  { %2749 = vtanh.f32 %v813_v28  ;;  %v2254_v38 = vmul.f32 -1.442695, %v813_v28 }
 0x9ba   :  { %v2517_v30 = vpop.f32.mrf.mxu0 }
 0x9bc   :  { %v900_v31 = vpop.f32.mrf.mxu0 }
 0x9bd   :  { %v901_v32 = vadd.f32 %v2929_v15, %v900_v31 }
 0x9be   :  { %v2532_v33 = vpop.f32.mrf.mxu0 }
 0x9bf   :  { %2751 = vtanh.f32 %v901_v32  ;;  %v2259_v39 = vmul.f32 -1.442695, %v901_v32 }
 0x9c0   :  { %v903_v34 = vpop.f32.mrf.mxu0  ;;  %2753 = vpow2.f32 %v2254_v38 }
 0x9c1   :  { %2755 = vpow2.f32 %v2259_v39 }
 0x9c2   :  { %v2533_v35 = vpop.f32.mrf.mxu0 }
 0x9c6   :  { %v2750_v36 = vpop.eup %2749 }
 0x9c7   :  { %823 = vrot.lane.b32.xlu1 %v2750_v36, %s2839_s18 }
 0x9cc   :  { %v2752_v37 = vpop.eup %2751 }
 0x9cd   :  { %915 = vrot.lane.b32.xlu0 %v2752_v37, %s2839_s18  ;;  %v2754_v40 = vpop.eup %2753 }
 0x9ce   :  { %v817_v41 = vadd.f32 1.0, %v2754_v40  ;;  %v2756_v42 = vpop.eup %2755 }
 0x9cf   :  { %v909_v43 = vadd.f32 1.0, %v2756_v42 }
 0x9d0   :  { %2757 = vrcp.f32 %v817_v41 }
 0x9d1   :  { %2759 = vrcp.f32 %v909_v43 }
 0x9dd   :  { %v2758_v44 = vpop.eup %2757 }
 0x9de   :  { %v2760_v48 = vpop.eup %2759  ;;  %v821_v51 = vmul.f32 %v2758_v44, %v3027_v62  ;;  %v2682_v62 = vld [vmem:[%s3387_s4 + $0x10] sm:$0xff]  }
 0x9df   :  { %v913_v54 = vmul.f32 %v2760_v48, %v3031_v2  ;;  %2537 = vmatpush3.bf16.msra.mxu1 %v2682_v62  ;;  %v2689_v62 = vld [vmem:[%s3384_s3 + $0x8] sm:$0xff]  }
 0x9e0   :  { %2550 = vmatprep.subr.bf16.mxu1 %v2837_v0 }
 0xa39   :  { %v824_v46 = vpop.permute.xlu1 %823 }
 0xa3a   :  { %v826_v47 = vmul.f32 %v2758_v44, %v824_v46 }
 0xa3c   :  { %828 = vrot.lane.b32.xlu1 %v826_v47, %s2839_s18 }
 0xa3f   :  { %v916_v49 = vpop.permute.xlu0 %915 }
 0xa40   :  { %v918_v50 = vmul.f32 %v2760_v48, %v916_v49  ;;  %v2685_v49 = vld [vmem:[%s3384_s3 + $0x18] sm:$0xff]  }
 0xa42   :  { %920 = vrot.lane.b32.xlu0 %v918_v50, %s2839_s18  ;;  %v2687_v50 = vld [vmem:[%s3387_s4 + $0x18] sm:$0xff]  }
 0xaae   :  { %v829_v52 = vpop.permute.xlu1 %828 }
 0xaaf   :  { %v3082_v53 = vadd.f32 %v829_v52, %v821_v51  ;;  %v2686_v52 = vld [vmem:[%s3384_s3 + $0x10] sm:$0xff]  }
 0xab1   :  { %2761 = vtanh.f32 %v3082_v53 }
 0xab4   :  { %v921_v55 = vpop.permute.xlu0 %920 }
 0xab5   :  { %v3086_v56 = vadd.f32 %v921_v55, %v913_v54  ;;  %v2688_v54 = vld [vmem:[%s3387_s4 + $0x10] sm:$0xff]  }
 0xab7   :  { %2763 = vtanh.f32 %v3086_v56 }
 0xabe   :  { %v2762_v59 = vpop.eup %2761 }
 0xabf   :  { %834 = vrot.lane.b32.xlu1 %v2762_v59, %s2839_s18 }
 0xac4   :  { %v2764_v61 = vpop.eup %2763 }
 0xac5   :  { %926 = vrot.lane.b32.xlu0 %v2764_v61, %s2839_s18 }
 0xb31   :  { %v835_v63 = vpop.permute.xlu1 %834 }
 0xb32   :  { %v3107_v1 = vmul.f32 %v2758_v44, %v835_v63 }
 0xb34   :  { %v930_v2 = vpack.c.bf16 %v3107_v1, %v3107_v1 }
 0xb36   :  { %999 = vrot.lane.b32.xlu1 %v930_v2, %s2840_s23  ;;  %v2690_v2 = vld [vmem:[%s3384_s3] sm:$0xff]  }
 0xb37   :  { %v927_v3 = vpop.permute.xlu0 %926 }
 0xb38   :  { %v929_v4 = vmul.f32 %v2760_v48, %v927_v3 }
 0xb3a   :  { %v935_v5 = vpack.c.bf16 %v929_v4, %v929_v4 }
 0xb3c   :  { %941 = vrot.lane.b32.xlu0 %v935_v5, %s2840_s23 }
 0xba8   :  { %v1000_v6 = vpop.permute.xlu1 %999 }
 0xba9   :  { %2547 = vmatmul.mubr.msk.bf16.vlgmr.msra.gmra.mxu0 %vm115_vm2, %v1000_v6 }
 0xbaa   :  { %2562 = vmatprep.mubr.msk.bf16.mxu0 %vm2838_vm0, %v2837_v0  ;;  %2559 = vmatpush3.bf16.msra.mxu0 %v2687_v50 }
 0xbab   :  { %2560 = vmatprep.subr.bf16.mxu0 %v2837_v0 }
 0xbae   :  { %v942_v8 = vpop.permute.xlu0 %941  ;;  %2561 = vmatpush3.bf16.msra.mxu0 %v2688_v54  ;;  %v2695_v54 = vld [vmem:[%s3384_s3 + $0x8] sm:$0xff]  }
 0xbaf   :  { %2539 = vmatmul.mubr.msk.bf16.vlgmr.msra.gmra.mxu1 %vm115_vm2, %v942_v8  ;;  %2574 = vmatprep.subr.bf16.mxu0 %v2837_v0 }
 0xbb0   :  { %2551 = vmatpush3.bf16.msra.mxu1 %v2683_v7  ;;  %2554 = vmatprep.mubr.msk.bf16.mxu1 %vm2838_vm0, %v2837_v0 }
 0xbb1   :  { %2552 = vmatprep.subr.bf16.mxu1 %v2837_v0 }
 0xbb4   :  { %2553 = vmatpush3.bf16.msra.mxu1 %v2684_v9 }
 0xbb5   :  { %2566 = vmatprep.subr.bf16.mxu1 %v2837_v0 }
 0xbb7   :  { %2555 = vmatmul.mubr.msk.bf16.vlgmr.msra.gmra.mxu1 %vm115_vm2, %v942_v8 }
 0xbb8   :  { %2570 = vmatprep.mubr.msk.bf16.mxu1 %vm2838_vm0, %v2837_v0  ;;  %2567 = vmatpush3.bf16.msra.mxu1 %v2685_v49 }
 0xbb9   :  { %2568 = vmatprep.subr.bf16.mxu1 %v2837_v0 }
 0xbbc   :  { %2569 = vmatpush3.bf16.msra.mxu1 %v2686_v52 }
 0xbbd   :  { %2582 = vmatprep.subr.bf16.mxu1 %v2837_v0 }
 0xc69   :  { %v1050_v11 = vpop.f32.mrf.mxu0 }
 0xc6b   :  { %v2548_v12 = vpop.f32.mrf.mxu0 }
 0xc6d   :  { %v1053_v13 = vpop.f32.mrf.mxu0 }
 0xc6f   :  { %v992_v14 = vpop.f32.mrf.mxu1  ;;  %v2549_v16 = vpop.f32.mrf.mxu0 }
 0xc70   :  { %v1051_v17 = vadd.f32 %v1050_v11, %v992_v14 }
 0xc71   :  { %v2540_v18 = vpop.f32.mrf.mxu1 }
 0xc72   :  { %v1063_v19 = vadd.f32 %v2964_v45, %v1051_v17 }
 0xc73   :  { %v995_v20 = vpop.f32.mrf.mxu1 }
 0xc74   :  { %2765 = vtanh.f32 %v1063_v19  ;;  %v2276_v30 = vmul.f32 -1.442695, %v1063_v19 }
 0xc75   :  { %v2541_v22 = vpop.f32.mrf.mxu1 }
 0xc77   :  { %v1150_v23 = vpop.f32.mrf.mxu1 }
 0xc78   :  { %v1151_v24 = vadd.f32 %v2929_v15, %v1150_v23 }
 0xc79   :  { %v2556_v25 = vpop.f32.mrf.mxu1 }
 0xc7a   :  { %2767 = vtanh.f32 %v1151_v24  ;;  %v2281_v31 = vmul.f32 -1.442695, %v1151_v24 }
 0xc7b   :  { %v1153_v26 = vpop.f32.mrf.mxu1  ;;  %2769 = vpow2.f32 %v2276_v30 }
 0xc7c   :  { %2771 = vpow2.f32 %v2281_v31 }
 0xc7d   :  { %v2557_v27 = vpop.f32.mrf.mxu1 }
 0xc81   :  { %v2766_v28 = vpop.eup %2765 }
 0xc82   :  { %1073 = vrot.lane.b32.xlu1 %v2766_v28, %s2839_s18 }
 0xc87   :  { %v2768_v29 = vpop.eup %2767 }
 0xc88   :  { %1165 = vrot.lane.b32.xlu0 %v2768_v29, %s2839_s18  ;;  %v2770_v32 = vpop.eup %2769 }
 0xc89   :  { %v1067_v33 = vadd.f32 1.0, %v2770_v32  ;;  %v2772_v34 = vpop.eup %2771 }
 0xc8a   :  { %v1159_v35 = vadd.f32 1.0, %v2772_v34 }
 0xc8b   :  { %2773 = vrcp.f32 %v1067_v33 }
 0xc8c   :  { %2775 = vrcp.f32 %v1159_v35 }
 0xc98   :  { %v2774_v36 = vpop.eup %2773 }
 0xc99   :  { %v2776_v39 = vpop.eup %2775  ;;  %v1071_v42 = vmul.f32 %v2774_v36, %v3082_v53 }
 0xc9a   :  { %v1163_v46 = vmul.f32 %v2776_v39, %v3086_v56 }
 0xcf4   :  { %v1074_v37 = vpop.permute.xlu1 %1073 }
 0xcf5   :  { %v1076_v38 = vmul.f32 %v2774_v36, %v1074_v37 }
 0xcf7   :  { %1078 = vrot.lane.b32.xlu1 %v1076_v38, %s2839_s18 }
 0xcfa   :  { %v1166_v40 = vpop.permute.xlu0 %1165 }
 0xcfb   :  { %v1168_v41 = vmul.f32 %v2776_v39, %v1166_v40  ;;  %v2691_v40 = vld [vmem:[%s3384_s3 + $0x18] sm:$0xff]  }
 0xcfd   :  { %1170 = vrot.lane.b32.xlu0 %v1168_v41, %s2839_s18  ;;  %v2693_v41 = vld [vmem:[%s3387_s4 + $0x18] sm:$0xff]  }
 0xd69   :  { %v1079_v43 = vpop.permute.xlu1 %1078 }
 0xd6a   :  { %v3137_v44 = vadd.f32 %v1079_v43, %v1071_v42  ;;  %v2692_v43 = vld [vmem:[%s3384_s3 + $0x10] sm:$0xff]  }
 0xd6c   :  { %2777 = vtanh.f32 %v3137_v44 }
 0xd6f   :  { %v1171_v47 = vpop.permute.xlu0 %1170 }
 0xd70   :  { %v3141_v48 = vadd.f32 %v1171_v47, %v1163_v46  ;;  %v2694_v46 = vld [vmem:[%s3387_s4 + $0x10] sm:$0xff]  }
 0xd72   :  { %2779 = vtanh.f32 %v3141_v48 }
 0xd79   :  { %v2778_v51 = vpop.eup %2777 }
 0xd7a   :  { %1084 = vrot.lane.b32.xlu1 %v2778_v51, %s2839_s18 }
 0xd7f   :  { %v2780_v53 = vpop.eup %2779 }
 0xd80   :  { %1176 = vrot.lane.b32.xlu0 %v2780_v53, %s2839_s18 }
 0xdec   :  { %v1085_v55 = vpop.permute.xlu1 %1084 }
 0xded   :  { %v3162_v56 = vmul.f32 %v2774_v36, %v1085_v55 }
 0xdef   :  { %v1180_v57 = vpack.c.bf16 %v3162_v56, %v3162_v56 }
 0xdf1   :  { %1249 = vrot.lane.b32.xlu1 %v1180_v57, %s2840_s23  ;;  %v2696_v57 = vld [vmem:[%s3384_s3] sm:$0xff]  }
 0xdf2   :  { %v1177_v58 = vpop.permute.xlu0 %1176 }
 0xdf3   :  { %v1179_v59 = vmul.f32 %v2776_v39, %v1177_v58 }
 0xdf5   :  { %v1185_v60 = vpack.c.bf16 %v1179_v59, %v1179_v59 }
 0xdf7   :  { %1191 = vrot.lane.b32.xlu0 %v1185_v60, %s2840_s23 }
 0xe63   :  { %v1250_v61 = vpop.permute.xlu1 %1249 }
 0xe64   :  { %2571 = vmatmul.mubr.msk.bf16.vlgmr.msra.gmra.mxu1 %vm115_vm2, %v1250_v61 }
 0xe65   :  { %2586 = vmatprep.mubr.msk.bf16.mxu1 %vm2838_vm0, %v2837_v0  ;;  %2583 = vmatpush3.bf16.msra.mxu1 %v2693_v41 }
 0xe66   :  { %2584 = vmatprep.subr.bf16.mxu1 %v2837_v0 }
 0xe69   :  { %v1192_v63 = vpop.permute.xlu0 %1191  ;;  %2585 = vmatpush3.bf16.msra.mxu1 %v2694_v46 }
 0xe6a   :  { %2563 = vmatmul.mubr.msk.bf16.vlgmr.msra.gmra.mxu0 %vm115_vm2, %v1192_v63  ;;  %2598 = vmatprep.subr.bf16.mxu1 %v2837_v0 }
 0xe6b   :  { %2575 = vmatpush3.bf16.msra.mxu0 %v2689_v62  ;;  %2578 = vmatprep.mubr.msk.bf16.mxu0 %vm2838_vm0, %v2837_v0 }
 0xe6c   :  { %2576 = vmatprep.subr.bf16.mxu0 %v2837_v0 }
 0xe6f   :  { %2577 = vmatpush3.bf16.msra.mxu0 %v2690_v2 }
 0xe70   :  { %2590 = vmatprep.subr.bf16.mxu0 %v2837_v0 }
 0xe72   :  { %2579 = vmatmul.mubr.msk.bf16.vlgmr.msra.gmra.mxu0 %vm115_vm2, %v1192_v63 }
 0xe73   :  { %2594 = vmatprep.mubr.msk.bf16.mxu0 %vm2838_vm0, %v2837_v0  ;;  %2591 = vmatpush3.bf16.msra.mxu0 %v2691_v40 }
 0xe74   :  { %2592 = vmatprep.subr.bf16.mxu0 %v2837_v0 }
 0xe77   :  { %2593 = vmatpush3.bf16.msra.mxu0 %v2692_v43 }
 0xe78   :  { %2606 = vmatprep.subr.bf16.mxu0 %v2837_v0 }
 0xf24   :  { %v1300_v3 = vpop.f32.mrf.mxu1 }
 0xf26   :  { %v2572_v4 = vpop.f32.mrf.mxu1 }
 0xf28   :  { %v1303_v5 = vpop.f32.mrf.mxu1 }
 0xf2a   :  { %v1242_v6 = vpop.f32.mrf.mxu0  ;;  %v2573_v7 = vpop.f32.mrf.mxu1 }
 0xf2b   :  { %v1301_v8 = vadd.f32 %v1300_v3, %v1242_v6  ;;  %v3244_v6 = vld [vmem:[%s3386_s5] ss:$0 sm:$0xff] }
 0xf2c   :  { %v2564_v9 = vpop.f32.mrf.mxu0 }
 0xf2d   :  { %v1313_v11 = vadd.f32 %v2964_v45, %v1301_v8 }
 0xf2e   :  { %v1245_v12 = vpop.f32.mrf.mxu0 }
 0xf2f   :  { %2781 = vtanh.f32 %v1313_v11  ;;  %v2298_v23 = vmul.f32 -1.442695, %v1313_v11 }
 0xf30   :  { %v2565_v13 = vpop.f32.mrf.mxu0 }
 0xf32   :  { %v1400_v14 = vpop.f32.mrf.mxu0 }
 0xf33   :  { %v1401_v16 = vadd.f32 %v2929_v15, %v1400_v14 }
 0xf34   :  { %v2580_v17 = vpop.f32.mrf.mxu0 }
 0xf35   :  { %2783 = vtanh.f32 %v1401_v16  ;;  %v2303_v24 = vmul.f32 -1.442695, %v1401_v16 }
 0xf36   :  { %v1403_v18 = vpop.f32.mrf.mxu0  ;;  %2785 = vpow2.f32 %v2298_v23 }
 0xf37   :  { %2787 = vpow2.f32 %v2303_v24 }
 0xf38   :  { %v2581_v19 = vpop.f32.mrf.mxu0 }
 0xf3c   :  { %v2782_v20 = vpop.eup %2781 }
 0xf3d   :  { %1323 = vrot.lane.b32.xlu1 %v2782_v20, %s2839_s18 }
 0xf42   :  { %v2784_v22 = vpop.eup %2783 }
 0xf43   :  { %1415 = vrot.lane.b32.xlu0 %v2784_v22, %s2839_s18  ;;  %v2786_v25 = vpop.eup %2785 }
 0xf44   :  { %v1317_v26 = vadd.f32 1.0, %v2786_v25  ;;  %v2788_v27 = vpop.eup %2787 }
 0xf45   :  { %v1409_v28 = vadd.f32 1.0, %v2788_v27 }
 0xf46   :  { %2789 = vrcp.f32 %v1317_v26 }
 0xf47   :  { %2791 = vrcp.f32 %v1409_v28 }
 0xf53   :  { %v2790_v15 = vpop.eup %2789 }
 0xf54   :  { %v2792_v31 = vpop.eup %2791  ;;  %v1321_v34 = vmul.f32 %v2790_v15, %v3137_v44 }
 0xf55   :  { %v1413_v37 = vmul.f32 %v2792_v31, %v3141_v48 }
 0xfaf   :  { %v1324_v29 = vpop.permute.xlu1 %1323 }
 0xfb0   :  { %v1326_v30 = vmul.f32 %v2790_v15, %v1324_v29 }
 0xfb2   :  { %1328 = vrot.lane.b32.xlu1 %v1326_v30, %s2839_s18 }
 0xfb5   :  { %v1416_v32 = vpop.permute.xlu0 %1415 }
 0xfb6   :  { %v1418_v33 = vmul.f32 %v2792_v31, %v1416_v32 }
 0xfb8   :  { %1420 = vrot.lane.b32.xlu0 %v1418_v33, %s2839_s18  ;;  %v2697_v33 = vld [vmem:[%s3384_s3 + $0x18] sm:$0xff]  }
0x1024   :  { %v1329_v35 = vpop.permute.xlu1 %1328 }
0x1025   :  { %v3192_v36 = vadd.f32 %v1329_v35, %v1321_v34  ;;  %v2699_v34 = vld [vmem:[%s3387_s4 + $0x18] sm:$0xff]  }
0x1027   :  { %2793 = vtanh.f32 %v3192_v36 }
0x102a   :  { %v1421_v38 = vpop.permute.xlu0 %1420 }
0x102b   :  { %v3196_v39 = vadd.f32 %v1421_v38, %v1413_v37  ;;  %v2700_v38 = vld [vmem:[%s3387_s4 + $0x10] sm:$0xff]  }
0x102d   :  { %2795 = vtanh.f32 %v3196_v39 }
0x1034   :  { %v2794_v42 = vpop.eup %2793 }
0x1035   :  { %1334 = vrot.lane.b32.xlu1 %v2794_v42, %s2839_s18 }
0x103a   :  { %v2796_v44 = vpop.eup %2795 }
0x103b   :  { %1426 = vrot.lane.b32.xlu0 %v2796_v44, %s2839_s18 }
0x10a7   :  { %v1335_v47 = vpop.permute.xlu1 %1334 }
0x10a8   :  { %v3217_v48 = vmul.f32 %v2790_v15, %v1335_v47  ;;  %v2701_v47 = vld [vmem:[%s3384_s3 + $0x8] sm:$0xff]  }
0x10aa   :  { %v1430_v49 = vpack.c.bf16 %v3217_v48, %v3217_v48 }
0x10ac   :  { %1499 = vrot.lane.b32.xlu1 %v1430_v49, %s2840_s23 }
0x10ad   :  { %v1427_v50 = vpop.permute.xlu0 %1426 }
0x10ae   :  { %v1429_v51 = vmul.f32 %v2792_v31, %v1427_v50  ;;  %v2702_v50 = vld [vmem:[%s3384_s3] sm:$0xff]  }
0x10b0   :  { %v1435_v52 = vpack.c.bf16 %v1429_v51, %v1429_v51 }
0x10b2   :  { %1441 = vrot.lane.b32.xlu0 %v1435_v52, %s2840_s23 }
0x111e   :  { %v1500_v53 = vpop.permute.xlu1 %1499 }
0x111f   :  { %2595 = vmatmul.mubr.msk.bf16.vlgmr.msra.gmra.mxu0 %vm115_vm2, %v1500_v53 }
0x1120   :  { %2610 = vmatprep.mubr.msk.bf16.mxu0 %vm2838_vm0, %v2837_v0  ;;  %2607 = vmatpush3.bf16.msra.mxu0 %v2699_v34 }
0x1121   :  { %2608 = vmatprep.subr.bf16.mxu0 %v2837_v0 }
0x1124   :  { %v1442_v55 = vpop.permute.xlu0 %1441  ;;  %2609 = vmatpush3.bf16.msra.mxu0 %v2700_v38 }
0x1125   :  { %2587 = vmatmul.mubr.msk.bf16.vlgmr.msra.gmra.mxu1 %vm115_vm2, %v1442_v55  ;;  %2622 = vmatprep.subr.bf16.mxu0 %v2837_v0 }
0x1126   :  { %2599 = vmatpush3.bf16.msra.mxu1 %v2695_v54  ;;  %2602 = vmatprep.mubr.msk.bf16.mxu1 %vm2838_vm0, %v2837_v0 }
0x1127   :  { %2600 = vmatprep.subr.bf16.mxu1 %v2837_v0 }
0x112a   :  { %2601 = vmatpush3.bf16.msra.mxu1 %v2696_v57 }
0x112b   :  { %2614 = vmatprep.subr.bf16.mxu1 %v2837_v0 }
0x112d   :  { %2603 = vmatmul.mubr.msk.bf16.vlgmr.msra.gmra.mxu1 %vm115_vm2, %v1442_v55  ;;  %v3303_v55 = vld [vmem:[%s3386_s5 + $0x1] ss:$0 sm:$0xff] }
0x112e   :  { %2618 = vmatprep.mubr.msk.bf16.mxu1 %vm2838_vm0, %v2837_v0  ;;  %2615 = vmatpush3.bf16.msra.mxu1 %v2697_v33 }
0x112f   :  { %2616 = vmatprep.subr.bf16.mxu1 %v2837_v0 }
0x11df   :  { %v1550_v58 = vpop.f32.mrf.mxu0 }
0x11e1   :  { %v2596_v59 = vpop.f32.mrf.mxu0 }
0x11e3   :  { %v1553_v60 = vpop.f32.mrf.mxu0 }
0x11e5   :  { %v1492_v61 = vpop.f32.mrf.mxu1  ;;  %v2597_v62 = vpop.f32.mrf.mxu0 }
0x11e6   :  { %v1551_v63 = vadd.f32 %v1550_v58, %v1492_v61 }
0x11e7   :  { %v2588_v2 = vpop.f32.mrf.mxu1 }
0x11e8   :  { %v1563_v3 = vadd.f32 %v2964_v45, %v1551_v63 }
0x11e9   :  { %v1495_v4 = vpop.f32.mrf.mxu1 }
0x11ea   :  { %2797 = vtanh.f32 %v1563_v3  ;;  %v2320_v45 = vmul.f32 -1.442695, %v1563_v3 }
0x11eb   :  { %v2589_v5 = vpop.f32.mrf.mxu1 }
0x11ed   :  { %v1650_v7 = vpop.f32.mrf.mxu1 }
0x11ee   :  { %v1651_v8 = vadd.f32 %v3244_v6, %v1650_v7 }
0x11ef   :  { %v2604_v9 = vpop.f32.mrf.mxu1 }
0x11f0   :  { %2799 = vtanh.f32 %v1651_v8  ;;  %v2325_v16 = vmul.f32 -1.442695, %v1651_v8 }
0x11f1   :  { %v1653_v11 = vpop.f32.mrf.mxu1  ;;  %2801 = vpow2.f32 %v2320_v45 }
0x11f2   :  { %2803 = vpow2.f32 %v2325_v16 }
0x11f3   :  { %v2605_v12 = vpop.f32.mrf.mxu1 }
0x11f7   :  { %v2798_v13 = vpop.eup %2797 }
0x11f8   :  { %1573 = vrot.lane.b32.xlu1 %v2798_v13, %s2839_s18 }
0x11fd   :  { %v2800_v14 = vpop.eup %2799 }
0x11fe   :  { %1665 = vrot.lane.b32.xlu0 %v2800_v14, %s2839_s18  ;;  %v2802_v17 = vpop.eup %2801 }
0x11ff   :  { %v1567_v18 = vadd.f32 1.0, %v2802_v17  ;;  %v2804_v19 = vpop.eup %2803 }
0x1200   :  { %v1659_v20 = vadd.f32 1.0, %v2804_v19 }
0x1201   :  { %2805 = vrcp.f32 %v1567_v18 }
0x1202   :  { %2807 = vrcp.f32 %v1659_v20 }
0x120e   :  { %v2806_v22 = vpop.eup %2805 }
0x120f   :  { %v2808_v25 = vpop.eup %2807  ;;  %v1571_v28 = vmul.f32 %v2806_v22, %v3192_v36  ;;  %v2698_v36 = vld [vmem:[%s3384_s3 + $0x10] sm:$0xff]  }
0x1210   :  { %v1663_v30 = vmul.f32 %v2808_v25, %v3196_v39  ;;  %2617 = vmatpush3.bf16.msra.mxu1 %v2698_v36 }
0x1211   :  { %2630 = vmatprep.subr.bf16.mxu1 %v2837_v0 }
0x126a   :  { %v1574_v23 = vpop.permute.xlu1 %1573 }
0x126b   :  { %v1576_v24 = vmul.f32 %v2806_v22, %v1574_v23 }
0x126d   :  { %1578 = vrot.lane.b32.xlu1 %v1576_v24, %s2839_s18 }
0x1270   :  { %v1666_v26 = vpop.permute.xlu0 %1665 }
0x1271   :  { %v1668_v27 = vmul.f32 %v2808_v25, %v1666_v26 }
0x1273   :  { %1670 = vrot.lane.b32.xlu0 %v1668_v27, %s2839_s18 }
0x12df   :  { %v1579_v15 = vpop.permute.xlu1 %1578 }
0x12e0   :  { %v3252_v29 = vadd.f32 %v1579_v15, %v1571_v28  ;;  %v2703_v28 = vld [vmem:[%s3384_s3 + $0x18] sm:$0xff]  }
0x12e1   :  { %v2705_v15 = vld [vmem:[%s3387_s4 + $0x18] sm:$0xff]  }
0x12e2   :  { %2809 = vtanh.f32 %v3252_v29 }
0x12e5   :  { %v1671_v31 = vpop.permute.xlu0 %1670 }
0x12e6   :  { %v3256_v32 = vadd.f32 %v1671_v31, %v1663_v30 }
0x12e8   :  { %2811 = vtanh.f32 %v3256_v32 }
0x12ef   :  { %v2810_v35 = vpop.eup %2809 }
0x12f0   :  { %1584 = vrot.lane.b32.xlu1 %v2810_v35, %s2839_s18 }
0x12f5   :  { %v2812_v37 = vpop.eup %2811 }
0x12f6   :  { %1676 = vrot.lane.b32.xlu0 %v2812_v37, %s2839_s18 }
0x1362   :  { %v1585_v39 = vpop.permute.xlu1 %1584 }
0x1363   :  { %v3277_v40 = vmul.f32 %v2806_v22, %v1585_v39 }
0x1365   :  { %v1680_v41 = vpack.c.bf16 %v3277_v40, %v3277_v40 }
0x1367   :  { %1749 = vrot.lane.b32.xlu1 %v1680_v41, %s2840_s23 }
0x1368   :  { %v1677_v42 = vpop.permute.xlu0 %1676 }
0x1369   :  { %v1679_v43 = vmul.f32 %v2808_v25, %v1677_v42 }
0x136b   :  { %v1685_v44 = vpack.c.bf16 %v1679_v43, %v1679_v43 }
0x136d   :  { %1691 = vrot.lane.b32.xlu0 %v1685_v44, %s2840_s23 }
0x13d9   :  { %v1750_v46 = vpop.permute.xlu1 %1749 }
0x13da   :  { %2619 = vmatmul.mubr.msk.bf16.vlgmr.msra.gmra.mxu1 %vm115_vm2, %v1750_v46 }
0x13db   :  { %2634 = vmatprep.mubr.msk.bf16.mxu1 %vm2838_vm0, %v2837_v0  ;;  %2631 = vmatpush3.bf16.msra.mxu1 %v2705_v15 }
0x13dc   :  { %2632 = vmatprep.subr.bf16.mxu1 %v2837_v0 }
0x13df   :  { %v1692_v49 = vpop.permute.xlu0 %1691 }
0x13e0   :  { %2611 = vmatmul.mubr.msk.bf16.vlgmr.msra.gmra.mxu0 %vm115_vm2, %v1692_v49 }
0x13e1   :  { %2623 = vmatpush3.bf16.msra.mxu0 %v2701_v47  ;;  %2626 = vmatprep.mubr.msk.bf16.mxu0 %vm2838_vm0, %v2837_v0 }
0x13e2   :  { %2624 = vmatprep.subr.bf16.mxu0 %v2837_v0 }
0x13e5   :  { %2625 = vmatpush3.bf16.msra.mxu0 %v2702_v50 }
0x13e6   :  { %2638 = vmatprep.subr.bf16.mxu0 %v2837_v0 }
0x13e8   :  { %2627 = vmatmul.mubr.msk.bf16.vlgmr.msra.gmra.mxu0 %vm115_vm2, %v1692_v49 }
0x13e9   :  { %2642 = vmatprep.mubr.msk.bf16.mxu0 %vm2838_vm0, %v2837_v0  ;;  %2639 = vmatpush3.bf16.msra.mxu0 %v2703_v28 }
0x13ea   :  { %2640 = vmatprep.subr.bf16.mxu0 %v2837_v0 }
0x149a   :  { %v1800_v51 = vpop.f32.mrf.mxu1 }
0x149c   :  { %v2620_v52 = vpop.f32.mrf.mxu1 }
0x149e   :  { %v1803_v53 = vpop.f32.mrf.mxu1 }
0x14a0   :  { %v1742_v54 = vpop.f32.mrf.mxu0  ;;  %v2621_v57 = vpop.f32.mrf.mxu1 }
0x14a1   :  { %v1801_v58 = vadd.f32 %v1800_v51, %v1742_v54 }
0x14a2   :  { %v2612_v59 = vpop.f32.mrf.mxu0 }
0x14a3   :  { %v1813_v60 = vadd.f32 %v3303_v55, %v1801_v58 }
0x14a4   :  { %v1745_v61 = vpop.f32.mrf.mxu0 }
0x14a5   :  { %2813 = vtanh.f32 %v1813_v60  ;;  %v2342_v9 = vmul.f32 -1.442695, %v1813_v60 }
0x14a6   :  { %v2613_v62 = vpop.f32.mrf.mxu0 }
0x14a8   :  { %v1900_v63 = vpop.f32.mrf.mxu0 }
0x14a9   :  { %v1901_v2 = vadd.f32 %v3244_v6, %v1900_v63 }
0x14aa   :  { %v2628_v3 = vpop.f32.mrf.mxu0 }
0x14ab   :  { %2815 = vtanh.f32 %v1901_v2  ;;  %v2347_v11 = vmul.f32 -1.442695, %v1901_v2 }
0x14ac   :  { %v1903_v4 = vpop.f32.mrf.mxu0  ;;  %2817 = vpow2.f32 %v2342_v9 }
0x14ad   :  { %2819 = vpow2.f32 %v2347_v11 }
0x14ae   :  { %v2629_v5 = vpop.f32.mrf.mxu0 }
0x14af   :  { %v2708_v5 = vld [vmem:[%s3388_s6] sm:$0xff]  }
0x14b2   :  { %v2814_v7 = vpop.eup %2813 }
0x14b3   :  { %1823 = vrot.lane.b32.xlu0 %v2814_v7, %s2839_s18 }
0x14b8   :  { %v2816_v8 = vpop.eup %2815 }
0x14b9   :  { %1915 = vrot.lane.b32.xlu1 %v2816_v8, %s2839_s18  ;;  %v2818_v12 = vpop.eup %2817 }
0x14ba   :  { %v1817_v13 = vadd.f32 1.0, %v2818_v12  ;;  %v2820_v14 = vpop.eup %2819 }
0x14bb   :  { %v1909_v45 = vadd.f32 1.0, %v2820_v14 }
0x14bc   :  { %2821 = vrcp.f32 %v1817_v13 }
0x14bd   :  { %2823 = vrcp.f32 %v1909_v45 }
0x14c9   :  { %v2822_v6 = vpop.eup %2821 }
0x14ca   :  { %v2824_v18 = vpop.eup %2823  ;;  %v1821_v22 = vmul.f32 %v2822_v6, %v3252_v29  ;;  %v2704_v29 = vld [vmem:[%s3384_s3 + $0x10] sm:$0xff]  }
0x14cb   :  { %v1913_v25 = vmul.f32 %v2824_v18, %v3256_v32  ;;  %2641 = vmatpush3.bf16.msra.mxu0 %v2704_v29  ;;  %v2706_v32 = vld [vmem:[%s3387_s4 + $0x10] sm:$0xff]  }
0x14cc   :  { %2633 = vmatpush3.bf16.msra.mxu1 %v2706_v32 }
0x1525   :  { %v1824_v16 = vpop.permute.xlu0 %1823 }
0x1526   :  { %v1826_v17 = vmul.f32 %v2822_v6, %v1824_v16  ;;  %v2365_v16 = vld [vmem:[%s3389_s7] ss:$0 sm:$0xff] }
0x1528   :  { %1828 = vrot.lane.b32.xlu0 %v1826_v17, %s2839_s18 }
0x152b   :  { %v1916_v19 = vpop.permute.xlu1 %1915 }
0x152c   :  { %v1918_v20 = vmul.f32 %v2824_v18, %v1916_v19 }
0x152e   :  { %1920 = vrot.lane.b32.xlu1 %v1918_v20, %s2839_s18 }
0x159a   :  { %v1829_v23 = vpop.permute.xlu0 %1828 }
0x159b   :  { %v1831_v24 = vadd.f32 %v1829_v23, %v1821_v22 }
0x159d   :  { %2825 = vtanh.f32 %v1831_v24 }
0x15a0   :  { %v1921_v26 = vpop.permute.xlu1 %1920 }
0x15a1   :  { %v1923_v27 = vadd.f32 %v1921_v26, %v1913_v25 }
0x15a3   :  { %2827 = vtanh.f32 %v1923_v27 }
0x15aa   :  { %v2826_v30 = vpop.eup %2825 }
0x15ab   :  { %1834 = vrot.lane.b32.xlu0 %v2826_v30, %s2839_s18 }
0x15b0   :  { %v2828_v31 = vpop.eup %2827 }
0x15b1   :  { %1926 = vrot.lane.b32.xlu1 %v2828_v31, %s2839_s18 }
0x161d   :  { %v1835_v33 = vpop.permute.xlu0 %1834 }
0x161e   :  { %v1837_v34 = vmul.f32 %v2822_v6, %v1835_v33 }
0x1620   :  { %v1930_v35 = vpack.c.bf16 %v1837_v34, %v1837_v34 }
0x1622   :  { %1999 = vrot.lane.b32.xlu1 %v1930_v35, %s2840_s23 }
0x1623   :  { %v1927_v36 = vpop.permute.xlu1 %1926 }
0x1624   :  { %v1929_v37 = vmul.f32 %v2824_v18, %v1927_v36 }
0x1626   :  { %v1935_v38 = vpack.c.bf16 %v1929_v37, %v1929_v37 }
0x1628   :  { %1941 = vrot.lane.b32.xlu0 %v1935_v38, %s2840_s23 }
0x1694   :  { %v2000_v0 = vpop.permute.xlu1 %1999 }
0x1695   :  { %2643 = vmatmul.mubr.msk.bf16.vlgmr.msra.gmra.mxu0 %vm115_vm2, %v2000_v0 }
0x169a   :  { %v1942_v39 = vpop.permute.xlu0 %1941 }
0x169b   :  { %2635 = vmatmul.mubr.msk.bf16.vlgmr.msra.gmra.mxu1 %vm115_vm2, %v1942_v39 }
0x1755   :  { %v2050_v41 = vpop.f32.mrf.mxu0 }
0x1757   :  { %v2644_v42 = vpop.f32.mrf.mxu0 }
0x1759   :  { %v2053_v43 = vpop.f32.mrf.mxu0 }
0x175b   :  { %v1992_v44 = vpop.f32.mrf.mxu1  ;;  %v2645_v46 = vpop.f32.mrf.mxu0 }
0x175c   :  { %v2051_v47 = vadd.f32 %v2050_v41, %v1992_v44 }
0x175d   :  { %v2636_v49 = vpop.f32.mrf.mxu1 }
0x175e   :  { %v2063_v50 = vadd.f32 %v3303_v55, %v2051_v47 }
0x175f   :  { %v1995_v51 = vpop.f32.mrf.mxu1 }
0x1760   :  { %2829 = vtanh.f32 %v2063_v50  ;;  %v2364_v54 = vmul.f32 -1.442695, %v2063_v50 }
0x1761   :  { %v2637_v52 = vpop.f32.mrf.mxu1 }
0x1762   :  { %2831 = vpow2.f32 %v2364_v54 }
0x176d   :  { %v2830_v53 = vpop.eup %2829 }
0x176e   :  { %2073 = vrot.lane.b32.xlu0 %v2830_v53, %s2839_s18 }
0x176f   :  { %v2832_v57 = vpop.eup %2831 }
0x1770   :  { %v2067_v58 = vadd.f32 1.0, %v2832_v57 }
0x1772   :  { %2833 = vrcp.f32 %v2067_v58 }
0x177f   :  { %v2834_v59 = vpop.eup %2833 }
0x1780   :  { %v2071_v55 = vmul.f32 %v2834_v59, %v1831_v24 }
0x17e0   :  { %v2074_v60 = vpop.permute.xlu0 %2073 }
0x17e1   :  { %v2076_v61 = vmul.f32 %v2834_v59, %v2074_v60 }
0x17e3   :  { %2078 = vrot.lane.b32.xlu1 %v2076_v61, %s2839_s18 }
0x17e7   :  { %338 = vrot.lane.b32.xlu1 %v2997_v21, %s2840_s23 }
0x17eb   :  { %839 = vrot.lane.b32.xlu1 %v3107_v1, %s2840_s23 }
0x17ef   :  { %1339 = vrot.lane.b32.xlu1 %v3217_v48, %s2840_s23  ;;  %v2707_v48 = vld [vmem:[%s3388_s6 + $0x8] sm:$0xff]  }
0x17f0   :  { %2646 = vmatprep.subr.bf16.mxu1 %v2707_v48 }
0x17f1   :  { %2647 = vmatpush3.bf16.msra.mxu1 %v2707_v48 }
0x17f2   :  { %2648 = vmatprep.subr.bf16.mxu1 %v2708_v5 }
0x17f3   :  { %1839 = vrot.lane.b32.xlu1 %v1837_v34, %s2840_s23 }
0x17f5   :  { %2649 = vmatpush3.bf16.msra.mxu1 %v2708_v5 }
0x1855   :  { %v2079_v62 = vpop.permute.xlu1 %2078 }
0x1856   :  { %v2081_v63 = vadd.f32 %v2079_v62, %v2071_v55 }
0x1858   :  { %2835 = vtanh.f32 %v2081_v63 }
0x1859   :  { %v339_v2 = vpop.permute.xlu1 %338 }
0x185a   :  { %342 = vst.msk [vmem:[#allocation2] sm:$0xf] %vm341_vm3, %v339_v2 }
0x185d   :  { %v840_v3 = vpop.permute.xlu1 %839 }
0x185e   :  { %842 = vst.msk [vmem:[#allocation2 + $0x8] sm:$0xf] %vm341_vm3, %v840_v3 }
0x1861   :  { %v1340_v21 = vpop.permute.xlu1 %1339 }
0x1862   :  { %1342 = vst.msk [vmem:[#allocation2 + $0x10] sm:$0xf] %vm341_vm3, %v1340_v21 }
0x1865   :  { %v2836_v1 = vpop.eup %2835  ;;  %v1840_v4 = vpop.permute.xlu1 %1839 }
0x1866   :  { %1842 = vst.msk [vmem:[#allocation2 + $0x18] sm:$0xf] %vm341_vm3, %v1840_v4  ;;  %2084 = vrot.lane.b32.xlu0 %v2836_v1, %s2839_s18 }
0x186a   :  { %589 = vrot.lane.b32.xlu0 %v3052_v10, %s2840_s23 }
0x186e   :  { %1089 = vrot.lane.b32.xlu0 %v3162_v56, %s2840_s23 }
0x1872   :  { %1589 = vrot.lane.b32.xlu0 %v3277_v40, %s2840_s23 }
0x18d8   :  { %v2085_v7 = vpop.permute.xlu0 %2084 }
0x18d9   :  { %v2087_v10 = vmul.f32 %v2834_v59, %v2085_v7 }
0x18db   :  { %2089 = vrot.lane.b32.xlu0 %v2087_v10, %s2840_s23 }
0x18dc   :  { %v590_v56 = vpop.permute.xlu0 %589 }
0x18dd   :  { %592 = vst.msk [vmem:[#allocation2 + $0x4] sm:$0xf] %vm341_vm3, %v590_v56 }
0x18e0   :  { %v1090_v40 = vpop.permute.xlu0 %1089 }
0x18e1   :  { %1092 = vst.msk [vmem:[#allocation2 + $0xc] sm:$0xf] %vm341_vm3, %v1090_v40 }
0x18e4   :  { %v1590_v8 = vpop.permute.xlu0 %1589  ;;  %v2093_v9 = vld [vmem:[#allocation2] sm:$0xff] }
0x18e5   :  { %1592 = vst.msk [vmem:[#allocation2 + $0x14] sm:$0xf] %vm341_vm3, %v1590_v8 }
0x18e8   :  { %v2094_v11 = vld [vmem:[#allocation2 + $0x8] sm:$0xff] }
0x18e9   :  { %v2097_v12 = vpack.c.bf16 %v2094_v11, %v2093_v9 }
0x18eb   :  { %2650 = vmatprep.mubr.msk.bf16.mxu1 %vm115_vm2, %v2097_v12 }
0x18ec   :  { %v2095_v14 = vld [vmem:[#allocation2 + $0x10] sm:$0xff] }
0x194d   :  { %v2090_v13 = vpop.permute.xlu0 %2089 }
0x194e   :  { %2092 = vst.msk [vmem:[#allocation2 + $0x1c] sm:$0xf] %vm341_vm3, %v2090_v13 }
0x1955   :  { %v2096_v45 = vld [vmem:[#allocation2 + $0x18] sm:$0xff] }
0x1956   :  { %v2098_v6 = vpack.c.bf16 %v2096_v45, %v2095_v14 }
0x1958   :  { %2651 = vmatmul.mubr.msk.bf16.vlgmr.msra.gmra.mxu1 %vm115_vm2, %v2098_v6 }
0x1a18   :  { %v2652_v17 = vpop.f32.mrf.mxu1 }
0x1a19   :  { %v2171_v18 = vadd.f32 %v2652_v17, %v2365_v16 }
0x1a1a   :  { %v2162_v19 = vpop.f32.mrf.mxu1 }
0x1a1b   :  { %2180 = vst.msk [vmem:[%s3390_s8 + $0x10] sm:$0xff] %vm2177_vm4, %v2171_v18  ;;  %v2163_v20 = vadd.f32 %v2365_v16, %v2162_v19 }
0x1a1c   :  { %v2653_v22 = vpop.f32.mrf.mxu1 }
0x1a1d   :  { %2178 = vst.msk [vmem:[%s3390_s8] sm:$0xff] %vm2177_vm4, %v2163_v20  ;;  %v2174_v23 = vadd.f32 %v2653_v22, %v2365_v16 }
0x1a1e   :  { %v2165_v24 = vpop.f32.mrf.mxu1 }
0x1a1f   :  { %2181 = vst.msk [vmem:[%s3390_s8 + $0x18] sm:$0xff] %vm2177_vm4, %v2174_v23  ;;  %v2166_v25 = vadd.f32 %v2365_v16, %v2165_v24 }
0x1a21   :  { %2179 = vst.msk [vmem:[%s3390_s8 + $0x8] sm:$0xff] %vm2177_vm4, %v2166_v25 }

</bundles_post_ra>
